<compile_context>
chip_gen: v7x
topology: tpu7x:2x2x1
jax: 0.10.0
libtpu: 0.0.40
codegen_flags: <defaults>
</compile_context>

<pallas_src>
import numpy as np
import jax
import jax.numpy as jnp
from jax import lax
from jax.experimental import pallas as pl
from jax.experimental.pallas import tpu as pltpu

# Problem sizes: small, but large enough that every grid axis has >= 2 tiles.
NV = 256      # number of vertices
NE = 256      # number of hyperedges
DIN = 64      # input_vdim == input_edim (p() is applied to both)
DOUT = 128    # output_vdim  (multiple of 128 -> lane-dense outputs / MXU N)
HEADS = 2     # num_heads
HD = HEADS * DOUT

TNV = 128     # NV tile
TNE = 128     # NE tile

NEG = -1e30   # additive mask value (bf16-representable; exp underflows to exactly 0)


def _score_block(ev_col, ee_row, bias):
    """relu(e_v + e_e) + additive mask.  Shared by all passes so the recomputed score is
    bit-identical to the one the softmax stats were built from."""
    return jnp.maximum(ev_col + ee_row, 0.0) + bias


# --------------------------------------------------------------------------------------
# Pass 1: attention logits + online softmax stats, streamed over the NE axis.
# --------------------------------------------------------------------------------------
def stats_kernel(vfeat_ref, efeat_t_ref, wev_ref, weet_ref, bias_ref,
                 ev_ref, m_ref, zinv_ref, ev_sc, m_sc, z_sc):
    j = pl.program_id(1)                       # NE tile (inner, reduction)
    bf16, f32 = jnp.bfloat16, jnp.float32

    @pl.when(j == 0)
    def _():
        ev_sc[...] = jnp.dot(vfeat_ref[...].astype(bf16), wev_ref[...],
                             preferred_element_type=f32)              # (TNV, H)
        m_sc[...] = jnp.full(m_sc.shape, NEG, m_sc.dtype)
        z_sc[...] = jnp.zeros_like(z_sc)

    e_e = jnp.dot(weet_ref[...], efeat_t_ref[...].astype(bf16),
                  preferred_element_type=f32)                          # (H, TNE)
    bias = bias_ref[...].astype(f32)                                   # (TNV, TNE)
    ev = ev_sc[...]
    m_old = m_sc[...]
    z_old = z_sc[...]

    m_cols, z_cols = [], []
    for h in range(HEADS):                     # static unroll, HEADS is tiny
        score = _score_block(ev[:, h:h + 1], e_e[h:h + 1, :], bias)    # (TNV, TNE)
        m_o = m_old[:, h:h + 1]
        m_n = jnp.maximum(m_o, jnp.max(score, axis=1, keepdims=True))
        p_sum = jnp.sum(jnp.exp(score - m_n), axis=1, keepdims=True)
        m_cols.append(m_n)
        z_cols.append(z_old[:, h:h + 1] * jnp.exp(m_o - m_n) + p_sum)
    m_sc[...] = jnp.concatenate(m_cols, axis=1)
    z_sc[...] = jnp.concatenate(z_cols, axis=1)

    @pl.when(j == pl.num_programs(1) - 1)
    def _():
        m_run = m_sc[...]
        z_run = z_sc[...]
        # Clamp the max at 0: valid rows always have max >= 0 (relu), so this is a no-op
        # for them; a fully-masked vertex gets z == 0 -> zinv == 0 -> a == 0 downstream,
        # matching the reference's explicit where(mask, softmax, 0).
        m_fin = jnp.maximum(m_run, 0.0)
        z_fin = z_run * jnp.exp(m_run - m_fin)
        ev_ref[...] = ev
        m_ref[...] = m_fin
        zinv_ref[...] = jnp.where(z_fin > 0.0, 1.0 / jnp.maximum(z_fin, 1e-30), 0.0)


# --------------------------------------------------------------------------------------
# Pass 2: 'in' aggregation (vertex -> hyperedge), NV is the reduction axis.
# --------------------------------------------------------------------------------------
def eout_kernel(ev_ref, m_ref, zinv_ref, vfeat_ref, efeat_t_ref, weet_ref,
                wvs_ref, bias_ref, dv2_ref, eout_ref, acc_ref):
    i = pl.program_id(1)                       # NV tile (inner, reduction)
    bf16, f32 = jnp.bfloat16, jnp.float32

    @pl.when(i == 0)
    def _():
        acc_ref[...] = jnp.zeros_like(acc_ref)

    e_e = jnp.dot(weet_ref[...], efeat_t_ref[...].astype(bf16),
                  preferred_element_type=f32)                          # (H, TNE)
    bias = bias_ref[...].astype(f32)
    ev = ev_ref[...]
    m = m_ref[...]
    zinv = zinv_ref[...]

    # lin_v projection with heads packed into lanes; wvs is pre-scaled by 1/H on the host.
    ft = jnp.dot(vfeat_ref[...].astype(bf16), wvs_ref[...],
                 preferred_element_type=f32) * dv2_ref[...]            # (TNV, H*DOUT)
    ft_b = ft.astype(bf16)

    for h in range(HEADS):
        score = _score_block(ev[:, h:h + 1], e_e[h:h + 1, :], bias)
        a_h = (jnp.exp(score - m[:, h:h + 1]) * zinv[:, h:h + 1]).astype(bf16)  # (TNV, TNE)
        # Contract the vertex axis (dim 0 of both) and accumulate (no concatenates).
        # NOTE: Mosaic inserts one (TNV, TNE) transpose per head here; if XLU ever binds
        # at real scale, recompute `a` transposed in this pass instead.
        acc_ref[...] += lax.dot_general(
            a_h, ft_b[:, h * DOUT:(h + 1) * DOUT],
            (((0,), (0,)), ((), ())), preferred_element_type=f32)      # (TNE, DOUT)

    @pl.when(i == pl.num_programs(1) - 1)
    def _():
        eout_ref[...] = acc_ref[...].astype(eout_ref.dtype)


# --------------------------------------------------------------------------------------
# Pass 3: 'con' aggregation (hyperedge -> vertex), NE is the reduction axis.
# --------------------------------------------------------------------------------------
def vout_kernel(ev_ref, m_ref, zinv_ref, efeat_t_ref, weet_ref, bias_ref,
                eout_ref, invde_ref, dv2h_ref, vout_ref, acc_ref):
    j = pl.program_id(1)                       # NE tile (inner, reduction)
    bf16, f32 = jnp.bfloat16, jnp.float32

    @pl.when(j == 0)
    def _():
        acc_ref[...] = jnp.zeros_like(acc_ref)

    e_e = jnp.dot(weet_ref[...], efeat_t_ref[...].astype(bf16),
                  preferred_element_type=f32)                          # (H, TNE)
    bias = bias_ref[...].astype(f32)
    ev = ev_ref[...]
    m = m_ref[...]
    zinv = zinv_ref[...]

    # zef is head-independent -> sum the per-head attention blocks, single matmul.
    a_sum = None
    for h in range(HEADS):
        score = _score_block(ev[:, h:h + 1], e_e[h:h + 1, :], bias)
        a_h = jnp.exp(score - m[:, h:h + 1]) * zinv[:, h:h + 1]
        a_sum = a_h if a_sum is None else a_sum + a_h

    zef = (eout_ref[...].astype(f32) * invde_ref[...]).astype(bf16)    # (TNE, DOUT)
    acc_ref[...] += jnp.dot(a_sum.astype(bf16), zef,
                            preferred_element_type=f32)                # (TNV, DOUT)

    @pl.when(j == pl.num_programs(1) - 1)
    def _():
        vout_ref[...] = (acc_ref[...] * dv2h_ref[...]).astype(vout_ref.dtype)


# --------------------------------------------------------------------------------------
# Host-side parameter folding (exact f32 math, done once per parameter set).
# --------------------------------------------------------------------------------------
def _fold_params(wp, wv, attn_v, attn_e, inc, dv2):
    hi = jax.lax.Precision.HIGHEST
    wp_r = wp.reshape(DIN, HEADS, DOUT)
    # Fold attention vectors into the projection weight: logits become tiny matmul columns.
    wev = jnp.einsum('dhk,hk->dh', wp_r, attn_v, precision=hi).astype(jnp.bfloat16)   # (DIN, H)
    weet = jnp.einsum('dhk,hk->hd', wp_r, attn_e, precision=hi).astype(jnp.bfloat16)  # (H, DIN)
    # lin_v weight, head-major columns (heads packed into lanes), pre-scaled by 1/H.
    wvs = (wv / HEADS).astype(jnp.bfloat16)                                            # (DIN, H*DOUT)
    # Additive mask bias, streamed as bf16 (half the dominant HBM stream at real sizes).
    bias = jnp.where(inc > 0, 0.0, NEG).astype(jnp.bfloat16)                           # (NV, NE)
    dv2h = (dv2 / HEADS).astype(jnp.float32)                                           # folded 1/H mean
    return wev, weet, wvs, bias, dv2h


def hcha_forward(vfeat, efeat, wp, wv, attn_v, attn_e, inc, dv2, invde):
    assert NV % TNV == 0 and NE % TNE == 0
    wev, weet, wvs, bias, dv2h = _fold_params(wp, wv, attn_v, attn_e, inc, dv2)
    efeat_t = efeat.T            # (DIN, NE): layout plumbing so e_e needs no in-kernel transpose
    gv, ge = NV // TNV, NE // TNE
    cparams = pltpu.CompilerParams(
        dimension_semantics=("parallel", "arbitrary"),   # outer axis shards across v7x TCs
        vmem_limit_bytes=32 * 1024 * 1024)               # explicit budget, safe on 64 MiB v7x
    full2 = lambda shp: pl.BlockSpec(shp, lambda a, b: (0, 0))
    f32, bf16 = jnp.float32, jnp.bfloat16

    # ---- pass 1: per-vertex logits + softmax stats ------------------------------------
    ev, mmax, zinv = pl.pallas_call(
        stats_kernel,
        grid=(gv, ge),
        in_specs=[
            pl.BlockSpec((TNV, DIN), lambda i, j: (i, 0)),    # vfeat
            pl.BlockSpec((DIN, TNE), lambda i, j: (0, j)),    # efeat^T
            full2((DIN, HEADS)),                              # wev (folded attn_v)
            full2((HEADS, DIN)),                              # weet (folded attn_e)
            pl.BlockSpec((TNV, TNE), lambda i, j: (i, j)),    # bias (bf16 additive mask)
        ],
        out_specs=[
            pl.BlockSpec((TNV, HEADS), lambda i, j: (i, 0)),  # e_v
            pl.BlockSpec((TNV, HEADS), lambda i, j: (i, 0)),  # row max m
            pl.BlockSpec((TNV, HEADS), lambda i, j: (i, 0)),  # 1 / row sum
        ],
        out_shape=[
            jax.ShapeDtypeStruct((NV, HEADS), f32),
            jax.ShapeDtypeStruct((NV, HEADS), f32),
            jax.ShapeDtypeStruct((NV, HEADS), f32),
        ],
        scratch_shapes=[pltpu.VMEM((TNV, HEADS), f32)] * 3,
        compiler_params=cparams,
    )(vfeat, efeat_t, wev, weet, bias)

    # ---- pass 2: eout (reduce over NV) -------------------------------------------------
    eout = pl.pallas_call(
        eout_kernel,
        grid=(ge, gv),
        in_specs=[
            pl.BlockSpec((TNV, HEADS), lambda j, i: (i, 0)),  # e_v
            pl.BlockSpec((TNV, HEADS), lambda j, i: (i, 0)),  # m
            pl.BlockSpec((TNV, HEADS), lambda j, i: (i, 0)),  # zinv
            pl.BlockSpec((TNV, DIN), lambda j, i: (i, 0)),    # vfeat
            pl.BlockSpec((DIN, TNE), lambda j, i: (0, j)),    # efeat^T
            full2((HEADS, DIN)),                              # weet
            full2((DIN, HD)),                                 # wvs (lin_v / H, heads in lanes)
            pl.BlockSpec((TNV, TNE), lambda j, i: (i, j)),    # bias
            pl.BlockSpec((TNV, 1), lambda j, i: (i, 0)),      # DV2
        ],
        out_specs=pl.BlockSpec((TNE, DOUT), lambda j, i: (j, 0)),
        out_shape=jax.ShapeDtypeStruct((NE, DOUT), bf16),
        scratch_shapes=[pltpu.VMEM((TNE, DOUT), f32)],
        compiler_params=cparams,
    )(ev, mmax, zinv, vfeat, efeat_t, weet, wvs, bias, dv2)

    # ---- pass 3: vout (reduce over NE, attention recomputed per NE tile) ---------------
    vout = pl.pallas_call(
        vout_kernel,
        grid=(gv, ge),
        in_specs=[
            pl.BlockSpec((TNV, HEADS), lambda i, j: (i, 0)),  # e_v
            pl.BlockSpec((TNV, HEADS), lambda i, j: (i, 0)),  # m
            pl.BlockSpec((TNV, HEADS), lambda i, j: (i, 0)),  # zinv
            pl.BlockSpec((DIN, TNE), lambda i, j: (0, j)),    # efeat^T
            full2((HEADS, DIN)),                              # weet
            pl.BlockSpec((TNV, TNE), lambda i, j: (i, j)),    # bias
            pl.BlockSpec((TNE, DOUT), lambda i, j: (j, 0)),   # eout (bf16)
            pl.BlockSpec((TNE, 1), lambda i, j: (j, 0)),      # invDE
            pl.BlockSpec((TNV, 1), lambda i, j: (i, 0)),      # DV2 / H
        ],
        out_specs=pl.BlockSpec((TNV, DOUT), lambda i, j: (i, 0)),
        out_shape=jax.ShapeDtypeStruct((NV, DOUT), bf16),
        scratch_shapes=[pltpu.VMEM((TNV, DOUT), f32)],
        compiler_params=cparams,
    )(ev, mmax, zinv, efeat_t, weet, bias, eout, invde, dv2h)

    # TODO(synk): feat_drop (p=0) and activation (None) are identities and therefore omitted.
    return vout, eout


def hcha_reference(vfeat, efeat, wp, wv, attn_v, attn_e, inc, dv2, invde):
    """Pure-JAX reference mirroring the PyTorch/DGL forward (f32 HIGHEST precision)."""
    hi = jax.lax.Precision.HIGHEST
    vp = jnp.einsum('nd,dk->nk', vfeat, wp, precision=hi).reshape(NV, HEADS, DOUT)
    ep = jnp.einsum('nd,dk->nk', efeat, wp, precision=hi).reshape(NE, HEADS, DOUT)
    e_v = (vp * attn_v[None]).sum(-1)                        # (NV, H)
    e_e = (ep * attn_e[None]).sum(-1)                        # (NE, H)
    score = jax.nn.relu(e_v[:, None, :] + e_e[None, :, :])   # (NV, NE, H)
    mask = (inc > 0)[:, :, None]
    sm = jnp.where(mask, score, -1e30)
    a = jnp.where(mask, jax.nn.softmax(sm, axis=1), 0.0)
    ft = (jnp.einsum('nd,dk->nk', vfeat, wv, precision=hi) * dv2).reshape(NV, HEADS, DOUT)
    eft = jnp.einsum('veh,vhd->ehd', a, ft, precision=hi)
    eout = eft.mean(1)                                       # (NE, D)
    zef = eout * invde
    vft = jnp.einsum('veh,ed->vhd', a, zef, precision=hi)
    vout = vft.mean(1) * dv2                                 # (NV, D)
    return vout, eout


if __name__ == "__main__":
    key = jax.random.PRNGKey(0)
    ks = jax.random.split(key, 8)
    f32 = jnp.float32

    vfeat = jax.random.normal(ks[0], (NV, DIN), f32)
    efeat = jax.random.normal(ks[1], (NE, DIN), f32)

    # Deterministic parameter init (shapes from __init__); xavier-normal-like scaling.
    gain = float(np.sqrt(2.0))  # relu gain
    std_p = gain * float(np.sqrt(2.0 / (DIN + HEADS * DOUT)))
    wp = jax.random.normal(ks[2], (DIN, HEADS * DOUT), f32) * std_p                       # p.weight.T
    wv = jax.random.normal(ks[3], (DIN, HEADS * DOUT), f32) * float(1.0 / np.sqrt(DIN))   # lin_v.weight.T
    std_a = gain * float(np.sqrt(2.0 / (HEADS * DOUT + DOUT)))
    attn_v = jax.random.normal(ks[4], (HEADS, DOUT), f32) * std_a
    attn_e = jax.random.normal(ks[5], (HEADS, DOUT), f32) * std_a

    # Sparse-ish dense incidence; every vertex and hyperedge keeps >= 1 connection so the
    # module's own DV2 = 1/sqrt(dv) and invDE = 1/de normalizations stay finite.
    inc = (jax.random.uniform(ks[6], (NV, NE)) < 0.1).astype(f32)
    inc = inc.at[:, 0].set(1.0).at[0, :].set(1.0)
    dv = inc.sum(axis=1)
    de = inc.sum(axis=0)
    dv2 = (1.0 / jnp.sqrt(dv)).reshape(NV, 1).astype(f32)     # DV2
    invde = (1.0 / de).reshape(NE, 1).astype(f32)             # invDE

    vout, eout = hcha_forward(vfeat, efeat, wp, wv, attn_v, attn_e, inc, dv2, invde)
    jax.block_until_ready((vout, eout))

    vref, eref = hcha_reference(vfeat, efeat, wp, wv, attn_v, attn_e, inc, dv2, invde)

    vout_np = np.asarray(vout, dtype=np.float32)
    eout_np = np.asarray(eout, dtype=np.float32)
    vref_np = np.asarray(vref)
    eref_np = np.asarray(eref)
    assert np.all(np.isfinite(vout_np)) and np.all(np.isfinite(eout_np))

    # Tolerances sized for deliberate bf16 MXU operands + bf16 outputs vs an f32-HIGHEST
    # reference; atol is scaled to the output magnitude (the degree normalizations make
    # values small).  vout is one extra chained bf16 stage deeper than eout.
    e_scale = float(np.max(np.abs(eref_np)))
    v_scale = float(np.max(np.abs(vref_np)))
    np.testing.assert_allclose(eout_np, eref_np, rtol=2e-2, atol=2e-2 * e_scale)
    np.testing.assert_allclose(vout_np, vref_np, rtol=3e-2, atol=3e-2 * v_scale)

    print("KERNEL_OK")
</pallas_src>

<mosaic_0001>
module attributes {stable_mosaic.version = 11 : i64} {
  func.func @stats_kernel(%arg0: i32, %arg1: i32, %arg2: memref<128x64xf32, #tpu.memory_space<vmem>>, %arg3: memref<64x128xf32, #tpu.memory_space<vmem>>, %arg4: memref<64x2xbf16, #tpu.memory_space<vmem>>, %arg5: memref<2x64xbf16, #tpu.memory_space<vmem>>, %arg6: memref<128x128xbf16, #tpu.memory_space<vmem>>, %arg7: memref<128x2xf32, #tpu.memory_space<vmem>>, %arg8: memref<128x2xf32, #tpu.memory_space<vmem>>, %arg9: memref<128x2xf32, #tpu.memory_space<vmem>>, %arg10: memref<128x2xf32, #tpu.memory_space<vmem>>, %arg11: memref<128x2xf32, #tpu.memory_space<vmem>>, %arg12: memref<128x2xf32, #tpu.memory_space<vmem>>) attributes {dimension_semantics = [#tpu.dimension_semantics<parallel>, #tpu.dimension_semantics<arbitrary>], iteration_bounds = array<i64: 2, 2>, scalar_prefetch = 0 : i64, scratch_operands = 3 : i64, tpu.core_type = #tpu.core_type<tc>, window_params = [{transform_indices = @transform_0, window_bounds = array<i64: 128, 64>}, {transform_indices = @transform_1, window_bounds = array<i64: 64, 128>}, {pipeline_mode = #tpu.pipeline_mode<synchronous>, transform_indices = @transform_2, window_bounds = array<i64: 64, 2>}, {pipeline_mode = #tpu.pipeline_mode<synchronous>, transform_indices = @transform_3, window_bounds = array<i64: 2, 64>}, {transform_indices = @transform_4, window_bounds = array<i64: 128, 128>}, {transform_indices = @transform_5, window_bounds = array<i64: 128, 2>}, {transform_indices = @transform_6, window_bounds = array<i64: 128, 2>}, {transform_indices = @transform_7, window_bounds = array<i64: 128, 2>}]} {
    %c0_i32 = arith.constant 0 : i32
    %0 = arith.cmpi eq, %arg1, %c0_i32 : i32
    %1 = arith.extui %0 : i1 to i32
    %c0_i32_0 = arith.constant 0 : i32
    %2 = arith.cmpi ne, %1, %c0_i32_0 : i32
    scf.if %2 {
      %c0_23 = arith.constant 0 : index
      %c0_24 = arith.constant 0 : index
      %63 = vector.load %arg2[%c0_23, %c0_24] : memref<128x64xf32, #tpu.memory_space<vmem>>, vector<128x64xf32>
      %64 = arith.truncf %63 : vector<128x64xf32> to vector<128x64xbf16>
      %c0_25 = arith.constant 0 : index
      %c0_26 = arith.constant 0 : index
      %65 = vector.load %arg4[%c0_25, %c0_26] : memref<64x2xbf16, #tpu.memory_space<vmem>>, vector<64x2xbf16>
      %cst_27 = arith.constant dense<0.000000e+00> : vector<128x2xf32>
      %66 = tpu.matmul %64, %65, %cst_27 {dimension_numbers = #tpu.dot_dimension_numbers<[1], [0], [0], [1], [0, 0, 1, 1], [], []>} : vector<128x64xbf16>, vector<64x2xbf16>, vector<128x2xf32> -> vector<128x2xf32>
      %c0_28 = arith.constant 0 : index
      %c0_29 = arith.constant 0 : index
      %67 = vector.load %arg10[%c0_28, %c0_29] : memref<128x2xf32, #tpu.memory_space<vmem>>, vector<128x2xf32>
      tpu.vector_store %arg10[%c0_28, %c0_29], %66 {strides = array<i32>} : memref<128x2xf32, #tpu.memory_space<vmem>>, vector<128x2xf32>,
      %cst_30 = arith.constant -1.000000e+30 : f32
      %68 = vector.broadcast %cst_30 : f32 to vector<128x2xf32>
      %c0_31 = arith.constant 0 : index
      %c0_32 = arith.constant 0 : index
      %69 = vector.load %arg11[%c0_31, %c0_32] : memref<128x2xf32, #tpu.memory_space<vmem>>, vector<128x2xf32>
      tpu.vector_store %arg11[%c0_31, %c0_32], %68 {strides = array<i32>} : memref<128x2xf32, #tpu.memory_space<vmem>>, vector<128x2xf32>,
      %cst_33 = arith.constant 0.000000e+00 : f32
      %70 = vector.broadcast %cst_33 : f32 to vector<128x2xf32>
      %c0_34 = arith.constant 0 : index
      %c0_35 = arith.constant 0 : index
      %71 = vector.load %arg12[%c0_34, %c0_35] : memref<128x2xf32, #tpu.memory_space<vmem>>, vector<128x2xf32>
      tpu.vector_store %arg12[%c0_34, %c0_35], %70 {strides = array<i32>} : memref<128x2xf32, #tpu.memory_space<vmem>>, vector<128x2xf32>,
    } else {
    }
    %c0 = arith.constant 0 : index
    %c0_1 = arith.constant 0 : index
    %3 = vector.load %arg5[%c0, %c0_1] : memref<2x64xbf16, #tpu.memory_space<vmem>>, vector<2x64xbf16>
    %c0_2 = arith.constant 0 : index
    %c0_3 = arith.constant 0 : index
    %4 = vector.load %arg3[%c0_2, %c0_3] : memref<64x128xf32, #tpu.memory_space<vmem>>, vector<64x128xf32>
    %5 = arith.truncf %4 : vector<64x128xf32> to vector<64x128xbf16>
    %cst = arith.constant dense<0.000000e+00> : vector<2x128xf32>
    %6 = tpu.matmul %3, %5, %cst {dimension_numbers = #tpu.dot_dimension_numbers<[1], [0], [0], [1], [0, 0, 1, 1], [], []>} : vector<2x64xbf16>, vector<64x128xbf16>, vector<2x128xf32> -> vector<2x128xf32>
    %c0_4 = arith.constant 0 : index
    %c0_5 = arith.constant 0 : index
    %7 = vector.load %arg6[%c0_4, %c0_5] : memref<128x128xbf16, #tpu.memory_space<vmem>>, vector<128x128xbf16>
    %8 = arith.extf %7 : vector<128x128xbf16> to vector<128x128xf32>
    %c0_6 = arith.constant 0 : index
    %c0_7 = arith.constant 0 : index
    %9 = vector.load %arg10[%c0_6, %c0_7] : memref<128x2xf32, #tpu.memory_space<vmem>>, vector<128x2xf32>
    %c0_8 = arith.constant 0 : index
    %c0_9 = arith.constant 0 : index
    %10 = vector.load %arg11[%c0_8, %c0_9] : memref<128x2xf32, #tpu.memory_space<vmem>>, vector<128x2xf32>
    %c0_10 = arith.constant 0 : index
    %c0_11 = arith.constant 0 : index
    %11 = vector.load %arg12[%c0_10, %c0_11] : memref<128x2xf32, #tpu.memory_space<vmem>>, vector<128x2xf32>
    %12 = vector.extract_strided_slice %9 {offsets = [0, 0], sizes = [128, 1], strides = [1, 1]} : vector<128x2xf32> to vector<128x1xf32>
    %13 = vector.extract_strided_slice %6 {offsets = [0, 0], sizes = [1, 128], strides = [1, 1]} : vector<2x128xf32> to vector<1x128xf32>
    %14 = vector.broadcast %12 : vector<128x1xf32> to vector<128x128xf32>
    %15 = vector.broadcast %13 : vector<1x128xf32> to vector<128x128xf32>
    %16 = arith.addf %14, %15 : vector<128x128xf32>
    %cst_12 = arith.constant 0.000000e+00 : f32
    %17 = vector.broadcast %cst_12 : f32 to vector<128x128xf32>
    %18 = arith.maximumf %16, %17 : vector<128x128xf32>
    %19 = arith.addf %18, %8 : vector<128x128xf32>
    %20 = vector.extract_strided_slice %10 {offsets = [0, 0], sizes = [128, 1], strides = [1, 1]} : vector<128x2xf32> to vector<128x1xf32>
    %cst_13 = arith.constant dense<0xFF800000> : vector<128xf32>
    %21 = vector.multi_reduction <maximumf>, %19, %cst_13 [1] : vector<128x128xf32> to vector<128xf32>
    %22 = vector.shape_cast %21 : vector<128xf32> to vector<128x1xf32>
    %23 = arith.maximumf %20, %22 : vector<128x1xf32>
    %24 = vector.broadcast %23 : vector<128x1xf32> to vector<128x128xf32>
    %25 = arith.subf %19, %24 : vector<128x128xf32>
    %26 = math.exp %25 : vector<128x128xf32>
    %cst_14 = arith.constant dense<0.000000e+00> : vector<128xf32>
    %27 = vector.multi_reduction <add>, %26, %cst_14 [1] : vector<128x128xf32> to vector<128xf32>
    %28 = vector.shape_cast %27 : vector<128xf32> to vector<128x1xf32>
    %29 = vector.extract_strided_slice %11 {offsets = [0, 0], sizes = [128, 1], strides = [1, 1]} : vector<128x2xf32> to vector<128x1xf32>
    %30 = arith.subf %20, %23 : vector<128x1xf32>
    %31 = math.exp %30 : vector<128x1xf32>
    %32 = arith.mulf %29, %31 : vector<128x1xf32>
    %33 = arith.addf %32, %28 : vector<128x1xf32>
    %34 = vector.extract_strided_slice %9 {offsets = [0, 1], sizes = [128, 1], strides = [1, 1]} : vector<128x2xf32> to vector<128x1xf32>
    %35 = vector.extract_strided_slice %6 {offsets = [1, 0], sizes = [1, 128], strides = [1, 1]} : vector<2x128xf32> to vector<1x128xf32>
    %36 = vector.broadcast %34 : vector<128x1xf32> to vector<128x128xf32>
    %37 = vector.broadcast %35 : vector<1x128xf32> to vector<128x128xf32>
    %38 = arith.addf %36, %37 : vector<128x128xf32>
    %cst_15 = arith.constant 0.000000e+00 : f32
    %39 = vector.broadcast %cst_15 : f32 to vector<128x128xf32>
    %40 = arith.maximumf %38, %39 : vector<128x128xf32>
    %41 = arith.addf %40, %8 : vector<128x128xf32>
    %42 = vector.extract_strided_slice %10 {offsets = [0, 1], sizes = [128, 1], strides = [1, 1]} : vector<128x2xf32> to vector<128x1xf32>
    %cst_16 = arith.constant dense<0xFF800000> : vector<128xf32>
    %43 = vector.multi_reduction <maximumf>, %41, %cst_16 [1] : vector<128x128xf32> to vector<128xf32>
    %44 = vector.shape_cast %43 : vector<128xf32> to vector<128x1xf32>
    %45 = arith.maximumf %42, %44 : vector<128x1xf32>
    %46 = vector.broadcast %45 : vector<128x1xf32> to vector<128x128xf32>
    %47 = arith.subf %41, %46 : vector<128x128xf32>
    %48 = math.exp %47 : vector<128x128xf32>
    %cst_17 = arith.constant dense<0.000000e+00> : vector<128xf32>
    %49 = vector.multi_reduction <add>, %48, %cst_17 [1] : vector<128x128xf32> to vector<128xf32>
    %50 = vector.shape_cast %49 : vector<128xf32> to vector<128x1xf32>
    %51 = vector.extract_strided_slice %11 {offsets = [0, 1], sizes = [128, 1], strides = [1, 1]} : vector<128x2xf32> to vector<128x1xf32>
    %52 = arith.subf %42, %45 : vector<128x1xf32>
    %53 = math.exp %52 : vector<128x1xf32>
    %54 = arith.mulf %51, %53 : vector<128x1xf32>
    %55 = arith.addf %54, %50 : vector<128x1xf32>
    %56 = tpu.concatenate %23, %45 in 1 : vector<128x1xf32>, vector<128x1xf32> -> vector<128x2xf32>
    %c0_18 = arith.constant 0 : index
    %c0_19 = arith.constant 0 : index
    %57 = vector.load %arg11[%c0_18, %c0_19] : memref<128x2xf32, #tpu.memory_space<vmem>>, vector<128x2xf32>
    tpu.vector_store %arg11[%c0_18, %c0_19], %56 {strides = array<i32>} : memref<128x2xf32, #tpu.memory_space<vmem>>, vector<128x2xf32>,
    %58 = tpu.concatenate %33, %55 in 1 : vector<128x1xf32>, vector<128x1xf32> -> vector<128x2xf32>
    %c0_20 = arith.constant 0 : index
    %c0_21 = arith.constant 0 : index
    %59 = vector.load %arg12[%c0_20, %c0_21] : memref<128x2xf32, #tpu.memory_space<vmem>>, vector<128x2xf32>
    tpu.vector_store %arg12[%c0_20, %c0_21], %58 {strides = array<i32>} : memref<128x2xf32, #tpu.memory_space<vmem>>, vector<128x2xf32>,
    %c1_i32 = arith.constant 1 : i32
    %60 = arith.cmpi eq, %arg1, %c1_i32 : i32
    %61 = arith.extui %60 : i1 to i32
    %c0_i32_22 = arith.constant 0 : i32
    %62 = arith.cmpi ne, %61, %c0_i32_22 : i32
    scf.if %62 {
      %c0_23 = arith.constant 0 : index
      %c0_24 = arith.constant 0 : index
      %63 = vector.load %arg11[%c0_23, %c0_24] : memref<128x2xf32, #tpu.memory_space<vmem>>, vector<128x2xf32>
      %c0_25 = arith.constant 0 : index
      %c0_26 = arith.constant 0 : index
      %64 = vector.load %arg12[%c0_25, %c0_26] : memref<128x2xf32, #tpu.memory_space<vmem>>, vector<128x2xf32>
      %cst_27 = arith.constant 0.000000e+00 : f32
      %65 = vector.broadcast %cst_27 : f32 to vector<128x2xf32>
      %66 = arith.maximumf %63, %65 : vector<128x2xf32>
      %67 = arith.subf %63, %66 : vector<128x2xf32>
      %68 = math.exp %67 : vector<128x2xf32>
      %69 = arith.mulf %64, %68 : vector<128x2xf32>
      %c0_28 = arith.constant 0 : index
      %c0_29 = arith.constant 0 : index
      %70 = vector.load %arg7[%c0_28, %c0_29] : memref<128x2xf32, #tpu.memory_space<vmem>>, vector<128x2xf32>
      tpu.vector_store %arg7[%c0_28, %c0_29], %9 {strides = array<i32>} : memref<128x2xf32, #tpu.memory_space<vmem>>, vector<128x2xf32>,
      %c0_30 = arith.constant 0 : index
      %c0_31 = arith.constant 0 : index
      %71 = vector.load %arg8[%c0_30, %c0_31] : memref<128x2xf32, #tpu.memory_space<vmem>>, vector<128x2xf32>
      tpu.vector_store %arg8[%c0_30, %c0_31], %66 {strides = array<i32>} : memref<128x2xf32, #tpu.memory_space<vmem>>, vector<128x2xf32>,
      %cst_32 = arith.constant 0.000000e+00 : f32
      %72 = vector.broadcast %cst_32 : f32 to vector<128x2xf32>
      %73 = arith.cmpf ogt, %69, %72 : vector<128x2xf32>
      %cst_33 = arith.constant 1.000000e-30 : f32
      %74 = vector.broadcast %cst_33 : f32 to vector<128x2xf32>
      %75 = arith.maximumf %69, %74 : vector<128x2xf32>
      %cst_34 = arith.constant 1.000000e+00 : f32
      %76 = vector.broadcast %cst_34 : f32 to vector<128x2xf32>
      %77 = arith.divf %76, %75 : vector<128x2xf32>
      %cst_35 = arith.constant 0.000000e+00 : f32
      %78 = vector.broadcast %cst_35 : f32 to vector<128x2xf32>
      %79 = arith.select %73, %77, %78 : vector<128x2xi1>, vector<128x2xf32>
      %c0_36 = arith.constant 0 : index
      %c0_37 = arith.constant 0 : index
      %80 = vector.load %arg9[%c0_36, %c0_37] : memref<128x2xf32, #tpu.memory_space<vmem>>, vector<128x2xf32>
      tpu.vector_store %arg9[%c0_36, %c0_37], %79 {strides = array<i32>} : memref<128x2xf32, #tpu.memory_space<vmem>>, vector<128x2xf32>,
    } else {
    }
    return
  }
  func.func @transform_0(%arg0: i32, %arg1: i32) -> (i32, i32) {
    %c0_i32 = arith.constant 0 : i32
    %c0_i32_0 = arith.constant 0 : i32
    return %arg0, %c0_i32 : i32, i32
  }
  func.func @transform_1(%arg0: i32, %arg1: i32) -> (i32, i32) {
    %c0_i32 = arith.constant 0 : i32
    %c0_i32_0 = arith.constant 0 : i32
    return %c0_i32, %arg1 : i32, i32
  }
  func.func @transform_2(%arg0: i32, %arg1: i32) -> (i32, i32) {
    %c0_i32 = arith.constant 0 : i32
    %c0_i32_0 = arith.constant 0 : i32
    %c0_i32_1 = arith.constant 0 : i32
    return %c0_i32, %c0_i32_0 : i32, i32
  }
  func.func @transform_3(%arg0: i32, %arg1: i32) -> (i32, i32) {
    %c0_i32 = arith.constant 0 : i32
    %c0_i32_0 = arith.constant 0 : i32
    %c0_i32_1 = arith.constant 0 : i32
    return %c0_i32, %c0_i32_0 : i32, i32
  }
  func.func @transform_4(%arg0: i32, %arg1: i32) -> (i32, i32) {
    %c0_i32 = arith.constant 0 : i32
    return %arg0, %arg1 : i32, i32
  }
  func.func @transform_5(%arg0: i32, %arg1: i32) -> (i32, i32) {
    %c0_i32 = arith.constant 0 : i32
    %c0_i32_0 = arith.constant 0 : i32
    return %arg0, %c0_i32 : i32, i32
  }
  func.func @transform_6(%arg0: i32, %arg1: i32) -> (i32, i32) {
    %c0_i32 = arith.constant 0 : i32
    %c0_i32_0 = arith.constant 0 : i32
    return %arg0, %c0_i32 : i32, i32
  }
  func.func @transform_7(%arg0: i32, %arg1: i32) -> (i32, i32) {
    %c0_i32 = arith.constant 0 : i32
    %c0_i32_0 = arith.constant 0 : i32
    return %arg0, %c0_i32 : i32, i32
  }
}

</mosaic_0001>

<bundles_post_ra>
// kernel: tpu_custom_call.1
= control target key start
LH: loop header
LB: loop body
LE: loop exit
PB: predicated region body
PF: predicated region fallthrough
CT: control target
= control target key end

     0   :  { %s4065_s0 = inlined_call_operand.vmem [shape: f32[256,64], index: 0, kind: input, shape index: {}]   ;;  %s4066_s1 = inlined_call_operand.vmem [shape: f32[64,256], index: 1, kind: input, shape index: {}]   ;;  %s4067_s2 = inlined_call_operand.vmem [shape: bf16[64,2], index: 2, kind: input, shape index: {}]   ;;  %s4068_s3 = inlined_call_operand.vmem [shape: bf16[2,64], index: 3, kind: input, shape index: {}]   ;;  %s4069_s4 = inlined_call_operand.vmem [shape: bf16[256,256], index: 4, kind: input, shape index: {}]   ;;  %s4070_s5 = inlined_call_operand.vmem [shape: f32[256,2], index: 5, kind: output, shape index: {0}]   ;;  %s4071_s6 = inlined_call_operand.vmem [shape: f32[256,2], index: 6, kind: output, shape index: {1}]   ;;  %s4072_s7 = inlined_call_operand.vmem [shape: f32[256,2], index: 7, kind: output, shape index: {2}]  }
   0x1   :  { %4143 = sst [smem:[#allocation56_spill]] %s4066_s1 }
   0x2   :  { %4144 = sst [smem:[#allocation57_spill]] %s4069_s4 }
   0x3   :  { %s2745_s24 = smov 0   ;;  %s2747_s25 = smov 0  }
   0x4   :  { %s2749_s26 = smov 0   ;;  %s2751_s27 = smov 0  }
   0x5   :  { %s2753_s28 = smov 0   ;;  %s2755_s29 = smov 0  }
   0x6   :  { %s2757_s30 = smov 0   ;;  %s2759_s8 = smov 0  }
   0x7   :  { %s2761_s9 = smov 0  }
   0x8 LB: > { %s27_s10 = sadd.s32 1, %s2689_s30  ;;  %s30_s11 = sadd.s32 1, %s2693_s8  ;;  %s2697_s9 = sphi %s2761_s9, %s18_s9   ;;  %s2693_s8 = sphi %s2759_s8, %s4302_s8   ;;  %s2689_s30 = sphi %s2757_s30, %s4301_s30   ;;  %s2685_s29 = sphi %s2755_s29, %s4300_s29   ;;  %s2681_s28 = sphi %s2753_s28, %s4299_s28   ;;  %s2677_s27 = sphi %s2751_s27, %s4298_s27   ;;  %s2673_s26 = sphi %s2749_s26, %s4297_s26   ;;  %s2669_s25 = sphi %s2747_s25, %s4296_s25   ;;  %s2665_s24 = sphi %s2745_s24, %s4295_s24  }
   0x9   : > { %p28_p0 = scmp.ge.s32.totalorder %s27_s10, 2  ;;  %s63_s12 = sadd.s32 1, %s2677_s27 }
   0xa   : > { %p70_p1 = scmp.ne.s32.totalorder %s2677_s27, %s2673_s26  ;;  %p71_p2 = scmp.eq.s32.totalorder %s2697_s9, 0 }
   0xb   : > { %s4304_s10 = smov (%p28_p0, %s27_s10), 0  ;;  %s4306_s11 = smov (!%p28_p0, %s30_s11), %s2693_s8 }
   0xc   : > { %4145 = sst [smem:[#allocation7_spill]] %s4304_s10  ;;  %s60_s13 = ssub.s32 %s2689_s30, %s4304_s10 }
   0xd   : > { %p2801_p3 = por %p71_p2, %p70_p1  ;;  %p32_p4 = scmp.ge.s32.totalorder %s4306_s11, 2 }
   0xe   : > { %p61_p5 = scmp.eq.s32.totalorder %s60_s13, 0  ;;  %p140_p6 = scmp.ne.s32.totalorder %s2669_s25, %s2665_s24 }
   0xf   : > { %s4308_s11 = smov (%p32_p4, %s4306_s11), 0  ;;  %s133_s19 = sadd.s32 1, %s2669_s25 }
  0x10   : > { %4147 = sst [smem:[#allocation8_spill]] %s4308_s11  ;;  %s128_s16 = ssub.s32 %s2693_s8, %s4308_s11 }
  0x11   : > { %s2810_s15 = scalar_select %p61_p5, %s2677_s27, %s63_s12  }
  0x12   : > { %p2814_p7 = por %p140_p6, %p71_p2  ;;  %s130_s18 = sor.u32 %s128_s16, %s60_s13 }
  0x13   : > { %p131_p8 = scmp.eq.s32.totalorder %s130_s18, 0  ;;  %p2210_p9 = scmp.ge.s32.totalorder %s2697_s9, 4 }
  0x15   : > { %s2820_s20 = scalar_select %p131_p8, %s2669_s25, %s133_s19  }
  0x16   : > { %250 = sbr.rel (%p2210_p9) target bundleno = 63 (0x3f), region = 24 }
  0x1d   : > { %262 = sbr.rel (!%p2801_p3) target bundleno = 43 (0x2b), region = 32  ;;  %s264_s21 = sand.u32 (%p2801_p3), 1, %s2677_s27  }
  0x1e   : > { %s2212_s22 = sshll.u32 (%p2801_p3), %s2689_s30, 3  ;;  %s2211_s23 = sshll.u32 (%p2801_p3), %s264_s21, 6 }
  0x1f   : > { %s4149_s1 = sld [smem:[#allocation56_spill]] (%p2801_p3)  ;;  %s266_s13 = scalar_lea.vmem (%p2801_p3), [#allocation5], %s2211_s23 }
  0x25   : > { %s268_s10 = scalar_lea.vmem %s4149_s1, %s2212_s22 }
  0x26   : > { %v310_v0 = vld [vmem:[%s268_s10] sm:$0xff]  ;;  %v312_v1 = vld [vmem:[%s268_s10 + $0x10] sm:$0xff] }
  0x27   : > { %v314_v2 = vld [vmem:[%s268_s10 + $0x20] sm:$0xff]  ;;  %311 = vst [vmem:[%s266_s13] sm:$0xff] %v310_v0  ;;  %313 = vst [vmem:[%s266_s13 + $0x8] sm:$0xff] %v312_v1  ;;  %v316_v3 = vld [vmem:[%s268_s10 + $0x30] sm:$0xff] }
  0x28   : > { %315 = vst [vmem:[%s266_s13 + $0x10] sm:$0xff] %v314_v2  ;;  %v318_v4 = vld [vmem:[%s268_s10 + $0x40] sm:$0xff]  ;;  %v320_v5 = vld [vmem:[%s268_s10 + $0x50] sm:$0xff]  ;;  %317 = vst [vmem:[%s266_s13 + $0x18] sm:$0xff] %v316_v3 }
  0x29   : > { %319 = vst [vmem:[%s266_s13 + $0x20] sm:$0xff] %v318_v4  ;;  %321 = vst [vmem:[%s266_s13 + $0x28] sm:$0xff] %v320_v5  ;;  %v322_v6 = vld [vmem:[%s268_s10 + $0x60] sm:$0xff]  ;;  %v324_v7 = vld [vmem:[%s268_s10 + $0x70] sm:$0xff] }
  0x2a   : > { %323 = vst [vmem:[%s266_s13 + $0x30] sm:$0xff] %v322_v6  ;;  %325 = vst [vmem:[%s266_s13 + $0x38] sm:$0xff] %v324_v7 }
  0x2b PF: > { %331 = sbr.rel (!%p2814_p7) target bundleno = 63 (0x3f), region = 70  ;;  %s333_s11 = sand.u32 (%p2814_p7), 1, %s2669_s25  }
  0x2c   : > { %s2245_s14 = sshll.u32 (%p2814_p7), %s2693_s8, 5  ;;  %s2213_s16 = sshll.u32 (%p2814_p7), %s333_s11, 6 }
  0x2d   : > { %s338_s18 = sadd.s32 (%p2814_p7), %s2689_s30, %s2245_s14  ;;  %s4150_s4 = sld [smem:[#allocation57_spill]] (%p2814_p7) }
  0x2e   : > { %s2216_s19 = sshll.u32 (%p2814_p7), %s338_s18, 2  ;;  %s335_s10 = scalar_lea.vmem (%p2814_p7), [#allocation6], %s2213_s16 }
  0x33   : > { %s2838_s23 = scalar_lea.vmem %s4150_s4, %s2216_s19 }
  0x34   : > { %v356_v8 = vld [vmem:[%s2838_s23] sm:$0xf]  ;;  %v358_v9 = vld [vmem:[%s2838_s23 + $0x8] sm:$0xf]  ;;  %v360_v10 = vld [vmem:[%s2838_s23 + $0x10] sm:$0xf] }
  0x35   : > { %357 = vst [vmem:[%s335_s10] sm:$0xf] %v356_v8  ;;  %359 = vst [vmem:[%s335_s10 + $0x4] sm:$0xf] %v358_v9  ;;  %v362_v11 = vld [vmem:[%s2838_s23 + $0x18] sm:$0xf] }
  0x36   : > { %361 = vst [vmem:[%s335_s10 + $0x8] sm:$0xf] %v360_v10  ;;  %v364_v12 = vld [vmem:[%s2838_s23 + $0x20] sm:$0xf]  ;;  %v366_v13 = vld [vmem:[%s2838_s23 + $0x28] sm:$0xf] }
  0x37   : > { %363 = vst [vmem:[%s335_s10 + $0xc] sm:$0xf] %v362_v11  ;;  %365 = vst [vmem:[%s335_s10 + $0x10] sm:$0xf] %v364_v12  ;;  %v368_v14 = vld [vmem:[%s2838_s23 + $0x30] sm:$0xf] }
  0x38   : > { %367 = vst [vmem:[%s335_s10 + $0x14] sm:$0xf] %v366_v13  ;;  %v370_v15 = vld [vmem:[%s2838_s23 + $0x38] sm:$0xf]  ;;  %v372_v16 = vld [vmem:[%s2838_s23 + $0x40] sm:$0xf] }
  0x39   : > { %369 = vst [vmem:[%s335_s10 + $0x18] sm:$0xf] %v368_v14  ;;  %371 = vst [vmem:[%s335_s10 + $0x1c] sm:$0xf] %v370_v15  ;;  %v374_v17 = vld [vmem:[%s2838_s23 + $0x48] sm:$0xf] }
  0x3a   : > { %373 = vst [vmem:[%s335_s10 + $0x20] sm:$0xf] %v372_v16  ;;  %v376_v18 = vld [vmem:[%s2838_s23 + $0x50] sm:$0xf]  ;;  %v378_v19 = vld [vmem:[%s2838_s23 + $0x58] sm:$0xf] }
  0x3b   : > { %375 = vst [vmem:[%s335_s10 + $0x24] sm:$0xf] %v374_v17  ;;  %377 = vst [vmem:[%s335_s10 + $0x28] sm:$0xf] %v376_v18  ;;  %v380_v20 = vld [vmem:[%s2838_s23 + $0x60] sm:$0xf] }
  0x3c   : > { %379 = vst [vmem:[%s335_s10 + $0x2c] sm:$0xf] %v378_v19  ;;  %v382_v21 = vld [vmem:[%s2838_s23 + $0x68] sm:$0xf]  ;;  %v384_v22 = vld [vmem:[%s2838_s23 + $0x70] sm:$0xf] }
  0x3d   : > { %381 = vst [vmem:[%s335_s10 + $0x30] sm:$0xf] %v380_v20  ;;  %383 = vst [vmem:[%s335_s10 + $0x34] sm:$0xf] %v382_v21  ;;  %v386_v23 = vld [vmem:[%s2838_s23 + $0x78] sm:$0xf] }
  0x3e   : > { %385 = vst [vmem:[%s335_s10 + $0x38] sm:$0xf] %v384_v22  ;;  %387 = vst [vmem:[%s335_s10 + $0x3c] sm:$0xf] %v386_v23 }
  0x3f PF: > { %p2217_p10 = scmp.ge.s32.totalorder %s2697_s9, 1  ;;  %p441_p11 = scmp.lt.s32.totalorder %s2697_s9, 5 }
  0x41   : > { %p442_p12 = pnand %p2217_p10, %p441_p11 }
  0x43   : > { %445 = sbr.rel (%p442_p12) target bundleno = 1098 (0x44a), region = 111 }
  0x4a   : > { %s448_s17 = sand.u32 1, %s2673_s26   ;;  %s455_s12 = sand.u32 1, %s2665_s24  }
  0x4b   : > { %s2218_s13 = sshll.u32 %s448_s17, 6  ;;  %s2219_s11 = sshll.u32 %s455_s12, 6 }
  0x4c   : > { %s2220_s14 = sshll.u32 %s2685_s29, 4  ;;  %s2881_s12 = scalar_lea.vmem [#allocation5], %s2218_s13 }
  0x4d   : > { %p506_p13 = scmp.lt.s32.totalorder %s2220_s14, 31  ;;  %p2228_p0 = scmp.ne.s32.totalorder %s2681_s28, 0 }
  0x4e   : > { %v2424_v24 = vld [vmem:[%s4067_s2] sm:$0xff] (!%p2228_p0)   ;;  %v2425_v25 = vld [vmem:[%s4067_s2 + $0x8] sm:$0xff] (!%p2228_p0)   ;;  %v2426_v26 = vld [vmem:[%s4067_s2 + $0x10] sm:$0xff] (!%p2228_p0)   ;;  %vm591_vm0 = vcmask (!%p2228_p0), 523264   ;;  %vm713_vm1 = vcmask (!%p2228_p0), 15360   ;;  %v2700_v53 = vmov (!%p2228_p0), 0.0  }
  0x4f   : > { %s4310_s14 = smov (!%p506_p13, %s2220_s14), 31  ;;  %534 = sbr.rel (%p2228_p0) target bundleno = 320 (0x140), region = 123 }
  0x50   : > { %s2221_s16 = sshll.u32 %s4310_s14, 3  ;;  %s2883_s14 = scalar_lea.vmem [#allocation6], %s2219_s11  ;;  %2302 = vmatprep.subr.bf16.mxu0 (!%p2228_p0), %v2424_v24  ;;  %2338 = vmatprep.subr.bf16.mxu1 (!%p2228_p0), %v2424_v24  ;;  %v2427_v33 = vld [vmem:[%s4067_s2 + $0x18] sm:$0xff] (!%p2228_p0)   ;;  %v2699_v52 = vmov (!%p2228_p0), -1e+30   ;;  %746 = vst.msk [vmem:[#allocation4] sm:$0xff] (!%p2228_p0), %vm713_vm1, %v2700_v53 }
  0x51   : > { %s2864_s21 = scalar_lea.vmem %s4065_s0, %s2221_s16  ;;  %s2869_s10 = scalar_lea.vmem %s4070_s5, %s2221_s16  ;;  %2303 = vmatpush3.bf16.msra.mxu0 (!%p2228_p0), %v2424_v24  ;;  %2342 = vmatpush3.bf16.msra.mxu1 (!%p2228_p0), %v2424_v24  ;;  %730 = vst.msk [vmem:[#allocation3] sm:$0xff] (!%p2228_p0), %vm713_vm1, %v2699_v52  ;;  %731 = vst.msk [vmem:[#allocation3 + $0x8] sm:$0xff] (!%p2228_p0), %vm713_vm1, %v2699_v52 }
  0x52   : > { %s2874_s24 = scalar_lea.vmem %s4071_s6, %s2221_s16  ;;  %s2879_s17 = scalar_lea.vmem %s4072_s7, %s2221_s16  ;;  %2304 = vmatprep.subr.bf16.mxu0 (!%p2228_p0), %v2425_v25  ;;  %2339 = vmatprep.subr.bf16.mxu1 (!%p2228_p0), %v2425_v25  ;;  %v535_v27 = vld [vmem:[%s2864_s21] sm:$0xff] (!%p2228_p0)  ;;  %v536_v28 = vld [vmem:[%s2864_s21 + $0x8] sm:$0xff] (!%p2228_p0)  ;;  %v537_v34 = vld [vmem:[%s2864_s21 + $0x10] sm:$0xff] (!%p2228_p0)  ;;  %732 = vst.msk [vmem:[#allocation3 + $0x10] sm:$0xff] (!%p2228_p0), %vm713_vm1, %v2699_v52 }
  0x53   : > { %v543_v29 = vld [vmem:[%s2864_s21 + $0x40] sm:$0xff] (!%p2228_p0)  ;;  %v551_v30 = vpack.c.bf16 (!%p2228_p0), %v536_v28, %v535_v27  ;;  %v544_v31 = vld [vmem:[%s2864_s21 + $0x48] sm:$0xff] (!%p2228_p0)  ;;  %v538_v35 = vld [vmem:[%s2864_s21 + $0x18] sm:$0xff] (!%p2228_p0)  ;;  %733 = vst.msk [vmem:[#allocation3 + $0x18] sm:$0xff] (!%p2228_p0), %vm713_vm1, %v2699_v52 }
  0x54   : > { %v555_v32 = vpack.c.bf16 (!%p2228_p0), %v544_v31, %v543_v29  ;;  %v545_v36 = vld [vmem:[%s2864_s21 + $0x50] sm:$0xff] (!%p2228_p0)  ;;  %v546_v37 = vld [vmem:[%s2864_s21 + $0x58] sm:$0xff] (!%p2228_p0)  ;;  %v539_v38 = vld [vmem:[%s2864_s21 + $0x20] sm:$0xff] (!%p2228_p0)  ;;  %v552_v42 = vpack.c.bf16 (!%p2228_p0), %v538_v35, %v537_v34  ;;  %734 = vst.msk [vmem:[#allocation3 + $0x20] sm:$0xff] (!%p2228_p0), %vm713_vm1, %v2699_v52 }
  0x55   : > { %2305 = vmatpush3.bf16.msra.mxu0 (!%p2228_p0), %v2425_v25  ;;  %2343 = vmatpush3.bf16.msra.mxu1 (!%p2228_p0), %v2425_v25  ;;  %v540_v39 = vld [vmem:[%s2864_s21 + $0x28] sm:$0xff] (!%p2228_p0)  ;;  %v547_v40 = vld [vmem:[%s2864_s21 + $0x60] sm:$0xff] (!%p2228_p0)  ;;  %v556_v43 = vpack.c.bf16 (!%p2228_p0), %v546_v37, %v545_v36  ;;  %v541_v46 = vld [vmem:[%s2864_s21 + $0x30] sm:$0xff] (!%p2228_p0)  ;;  %735 = vst.msk [vmem:[#allocation3 + $0x28] sm:$0xff] (!%p2228_p0), %vm713_vm1, %v2699_v52 }
  0x56   : > { %2306 = vmatprep.subr.bf16.mxu0 %v2426_v26  ;;  %2340 = vmatprep.subr.bf16.mxu1 %v2426_v26  ;;  %v548_v41 = vld [vmem:[%s2864_s21 + $0x68] sm:$0xff]  ;;  %v553_v44 = vpack.c.bf16 %v540_v39, %v539_v38  ;;  %v542_v47 = vld [vmem:[%s2864_s21 + $0x38] sm:$0xff]  ;;  %v549_v48 = vld [vmem:[%s2864_s21 + $0x70] sm:$0xff]  ;;  %736 = vst.msk [vmem:[#allocation3 + $0x30] sm:$0xff] %vm713_vm1, %v2699_v52 }
  0x57   : > { %2310 = vmatprep.mubr.msk.bf16.mxu0 %vm591_vm0, %v551_v30  ;;  %2318 = vmatprep.mubr.msk.bf16.mxu1 %vm591_vm0, %v555_v32  ;;  %v557_v45 = vpack.c.bf16 %v548_v41, %v547_v40  ;;  %v550_v49 = vld [vmem:[%s2864_s21 + $0x78] sm:$0xff]  ;;  %v554_v50 = vpack.c.bf16 %v542_v47, %v541_v46  ;;  %737 = vst.msk [vmem:[#allocation3 + $0x38] sm:$0xff] %vm713_vm1, %v2699_v52  ;;  %738 = vst.msk [vmem:[#allocation3 + $0x40] sm:$0xff] %vm713_vm1, %v2699_v52 }
  0x58   : > { %v558_v51 = vpack.c.bf16 %v550_v49, %v549_v48  ;;  %739 = vst.msk [vmem:[#allocation3 + $0x48] sm:$0xff] %vm713_vm1, %v2699_v52  ;;  %740 = vst.msk [vmem:[#allocation3 + $0x50] sm:$0xff] %vm713_vm1, %v2699_v52 }
  0x59   : > { %2307 = vmatpush3.bf16.msra.mxu0 %v2426_v26  ;;  %2344 = vmatpush3.bf16.msra.mxu1 %v2426_v26  ;;  %741 = vst.msk [vmem:[#allocation3 + $0x58] sm:$0xff] %vm713_vm1, %v2699_v52  ;;  %742 = vst.msk [vmem:[#allocation3 + $0x60] sm:$0xff] %vm713_vm1, %v2699_v52 }
  0x5a   : > { %2308 = vmatprep.subr.bf16.mxu0 %v2427_v33  ;;  %2341 = vmatprep.subr.bf16.mxu1 %v2427_v33  ;;  %743 = vst.msk [vmem:[#allocation3 + $0x68] sm:$0xff] %vm713_vm1, %v2699_v52  ;;  %744 = vst.msk [vmem:[#allocation3 + $0x70] sm:$0xff] %vm713_vm1, %v2699_v52 }
  0x5b   : > { %745 = vst.msk [vmem:[#allocation3 + $0x78] sm:$0xff] %vm713_vm1, %v2699_v52  ;;  %747 = vst.msk [vmem:[#allocation4 + $0x8] sm:$0xff] %vm713_vm1, %v2700_v53 }
  0x5c   : > { %748 = vst.msk [vmem:[#allocation4 + $0x10] sm:$0xff] %vm713_vm1, %v2700_v53  ;;  %749 = vst.msk [vmem:[#allocation4 + $0x18] sm:$0xff] %vm713_vm1, %v2700_v53 }
  0x5d   : > { %2309 = vmatpush3.bf16.msra.mxu0 %v2427_v33  ;;  %2345 = vmatpush3.bf16.msra.mxu1 %v2427_v33  ;;  %750 = vst.msk [vmem:[#allocation4 + $0x20] sm:$0xff] %vm713_vm1, %v2700_v53  ;;  %751 = vst.msk [vmem:[#allocation4 + $0x28] sm:$0xff] %vm713_vm1, %v2700_v53 }
  0x5e   : > { %752 = vst.msk [vmem:[#allocation4 + $0x30] sm:$0xff] %vm713_vm1, %v2700_v53  ;;  %753 = vst.msk [vmem:[#allocation4 + $0x38] sm:$0xff] %vm713_vm1, %v2700_v53 }
  0x5f   : > { %754 = vst.msk [vmem:[#allocation4 + $0x40] sm:$0xff] %vm713_vm1, %v2700_v53  ;;  %755 = vst.msk [vmem:[#allocation4 + $0x48] sm:$0xff] %vm713_vm1, %v2700_v53 }
  0x60   : > { %2311 = vmatmul.mubr.msk.bf16.vlgmr.msra.gmra.mrb[0].mxu0 %vm591_vm0, %v552_v42  ;;  %2319 = vmatmul.mubr.msk.bf16.vlgmr.msra.gmra.mrb[0].mxu1 %vm591_vm0, %v556_v43  ;;  %756 = vst.msk [vmem:[#allocation4 + $0x50] sm:$0xff] %vm713_vm1, %v2700_v53  ;;  %757 = vst.msk [vmem:[#allocation4 + $0x58] sm:$0xff] %vm713_vm1, %v2700_v53 }
  0x61   : > { %2314 = vmatprep.mubr.msk.bf16.mxu0 %vm591_vm0, %v553_v44  ;;  %2322 = vmatprep.mubr.msk.bf16.mxu1 %vm591_vm0, %v557_v45  ;;  %758 = vst.msk [vmem:[#allocation4 + $0x60] sm:$0xff] %vm713_vm1, %v2700_v53  ;;  %759 = vst.msk [vmem:[#allocation4 + $0x68] sm:$0xff] %vm713_vm1, %v2700_v53 }
  0x62   : > { %760 = vst.msk [vmem:[#allocation4 + $0x70] sm:$0xff] %vm713_vm1, %v2700_v53  ;;  %761 = vst.msk [vmem:[#allocation4 + $0x78] sm:$0xff] %vm713_vm1, %v2700_v53 }
  0x68   : > { %2315 = vmatmul.mubr.msk.bf16.gmra.mrb[4].mxu0 %vm591_vm0, %v554_v50  ;;  %2323 = vmatmul.mubr.msk.bf16.gmra.mrb[4].mxu1 %vm591_vm0, %v558_v51 }
 0x133   : > { %v2312_v54 = vpop.f32.mrb[0].mxu0  ;;  %v2320_v55 = vpop.f32.mrb[0].mxu1 }
 0x134   : > { %716 = vst.msk [vmem:[#allocation2 + $0x10] sm:$0xff] %vm713_vm1, %v2312_v54  ;;  %724 = vst.msk [vmem:[#allocation2 + $0x50] sm:$0xff] %vm713_vm1, %v2320_v55  ;;  %v650_v56 = vpop.f32.mrb[1].mxu0  ;;  %v682_v57 = vpop.f32.mrb[1].mxu1 }
 0x135   : > { %714 = vst.msk [vmem:[#allocation2] sm:$0xff] %vm713_vm1, %v650_v56  ;;  %722 = vst.msk [vmem:[#allocation2 + $0x40] sm:$0xff] %vm713_vm1, %v682_v57  ;;  %v2313_v58 = vpop.f32.mrb[2].mxu0  ;;  %v2321_v59 = vpop.f32.mrb[2].mxu1 }
 0x136   : > { %717 = vst.msk [vmem:[#allocation2 + $0x18] sm:$0xff] %vm713_vm1, %v2313_v58  ;;  %725 = vst.msk [vmem:[#allocation2 + $0x58] sm:$0xff] %vm713_vm1, %v2321_v59  ;;  %v653_v60 = vpop.f32.mrb[3].mxu0  ;;  %v685_v61 = vpop.f32.mrb[3].mxu1 }
 0x137   : > { %715 = vst.msk [vmem:[#allocation2 + $0x8] sm:$0xff] %vm713_vm1, %v653_v60  ;;  %723 = vst.msk [vmem:[#allocation2 + $0x48] sm:$0xff] %vm713_vm1, %v685_v61 }
 0x13b   : > { %v2316_v62 = vpop.f32.mrb[4].mxu0  ;;  %v2324_v63 = vpop.f32.mrb[4].mxu1 }
 0x13c   : > { %720 = vst.msk [vmem:[#allocation2 + $0x30] sm:$0xff] %vm713_vm1, %v2316_v62  ;;  %728 = vst.msk [vmem:[#allocation2 + $0x70] sm:$0xff] %vm713_vm1, %v2324_v63  ;;  %v666_v0 = vpop.f32.mrb[5].mxu0  ;;  %v698_v1 = vpop.f32.mrb[5].mxu1 }
 0x13d   : > { %718 = vst.msk [vmem:[#allocation2 + $0x20] sm:$0xff] %vm713_vm1, %v666_v0  ;;  %726 = vst.msk [vmem:[#allocation2 + $0x60] sm:$0xff] %vm713_vm1, %v698_v1  ;;  %v2317_v2 = vpop.f32.mrb[6].mxu0  ;;  %v2325_v3 = vpop.f32.mrb[6].mxu1 }
 0x13e   : > { %721 = vst.msk [vmem:[#allocation2 + $0x38] sm:$0xff] %vm713_vm1, %v2317_v2  ;;  %729 = vst.msk [vmem:[#allocation2 + $0x78] sm:$0xff] %vm713_vm1, %v2325_v3  ;;  %v669_v4 = vpop.f32.mrb[7].mxu0  ;;  %v701_v5 = vpop.f32.mrb[7].mxu1 }
 0x13f   : > { %719 = vst.msk [vmem:[#allocation2 + $0x28] sm:$0xff] %vm713_vm1, %v669_v4  ;;  %727 = vst.msk [vmem:[#allocation2 + $0x68] sm:$0xff] %vm713_vm1, %v701_v5 }
 0x140 PF: > { %v763_v6 = vld [vmem:[%s2881_s12] sm:$0xff]  ;;  %v764_v7 = vld [vmem:[%s2881_s12 + $0x8] sm:$0xff]  ;;  %v765_v8 = vld [vmem:[%s2881_s12 + $0x10] sm:$0xff]  ;;  %v2701_v9 = vmov 0.0   ;;  %v2702_v12 = vmov 0   ;;  %vm2703_vm2 = vmmov 0   ;;  %v979_v54 = vlaneseq }
 0x141   : > { %2326 = vmatprep.subr.bf16.mxu0 %v2701_v9  ;;  %v771_v10 = vpack.c.bf16 %v764_v7, %v763_v6  ;;  %v766_v11 = vld [vmem:[%s2881_s12 + $0x18] sm:$0xff]  ;;  %2428 = vset.pattern.permute.xlu1 %v2702_v12  ;;  %v2975_v13 = vld [vmem:[#allocation2 + $0x10] sm:$0xff]  ;;  %v4075_v14 = vmov 1   ;;  %v767_v16 = vld [vmem:[%s2881_s12 + $0x20] sm:$0xff]  ;;  %vm775_vm3 = vcmask 523264   ;;  %vm1723_vm4 = vcmask 7168  }
 0x142   : > { %4151 = vst [vmem:[#allocation9_spill] sm:$0xff] %v2975_v13  ;;  %2334 = vmatprep.mubr.msk.bf16.mxu0 %vm2703_vm2, %v2701_v9  ;;  %2430 = vset.pattern.permute.xlu0 %v4075_v14  ;;  %v772_v15 = vpack.c.bf16 %v766_v11, %v765_v8  ;;  %v768_v17 = vld [vmem:[%s2881_s12 + $0x28] sm:$0xff]  ;;  %v2981_v18 = vld [vmem:[#allocation2 + $0x18] sm:$0xff]  ;;  %v2983_v19 = vld [vmem:[#allocation2 + $0x40] sm:$0xff]  ;;  %v3070_v55 = vshrl.u32 %v979_v54, 7  ;;  %vm1740_vm5 = vcmask 15360  }
 0x143   : > { %2327 = vmatpush3.bf16.msra.mxu0 %v771_v10  ;;  %911 = vperm.xlu1 %2428, %v2975_v13   ;;  %4152 = vst [vmem:[#allocation10_spill] sm:$0xff] %v2981_v18  ;;  %4153 = vst [vmem:[#allocation11_spill] sm:$0xff] %v2983_v19  ;;  %v773_v20 = vpack.c.bf16 %v768_v17, %v767_v16  ;;  %v769_v21 = vld [vmem:[%s2881_s12 + $0x30] sm:$0xff]  ;;  %v770_v22 = vld [vmem:[%s2881_s12 + $0x38] sm:$0xff]  ;;  %p2242_p1 = scmp.ne.s32.totalorder %s2681_s28, 1 }
 0x144   : > { %2328 = vmatprep.subr.bf16.mxu0 %v2701_v9  ;;  %1352 = vperm.xlu0 %2430, %v2983_v19   ;;  %v774_v24 = vpack.c.bf16 %v770_v22, %v769_v21  ;;  %v2994_v26 = vld [vmem:[#allocation2] sm:$0xff]  ;;  %v3002_v28 = vld [vmem:[#allocation2 + $0x48] sm:$0xff]  ;;  %v3008_v30 = vld [vmem:[#allocation2 + $0x58] sm:$0xff]  ;;  %v981_v58 = vsub.s32 0, %v3070_v55 }
 0x145   : > { %v2992_v25 = vld [vmem:[#allocation2 + $0x38] sm:$0xff]  ;;  %4156 = vst [vmem:[#allocation14_spill] sm:$0xff] %v2994_v26  ;;  %v762_v27 = vld [vmem:[%s4068_s3] sm:$0x1]  ;;  %4157 = vst [vmem:[#allocation15_spill] sm:$0xff] %v3002_v28 }
 0x146   : > { %v2988_v23 = vld [vmem:[#allocation2 + $0x28] sm:$0xff]  ;;  %4155 = vst [vmem:[#allocation13_spill] sm:$0xff] %v2992_v25  ;;  %4159 = vst [vmem:[#allocation17_spill] sm:$0xff] %v3008_v30  ;;  %v3010_v31 = vld [vmem:[#allocation2 + $0x20] sm:$0xff] }
 0x147   : > { %2329 = vmatpush3.bf16.msra.mxu0 %v772_v15  ;;  %916 = vperm.xlu1 %2428, %v2981_v18   ;;  %4154 = vst [vmem:[#allocation12_spill] sm:$0xff] %v2988_v23  ;;  %v3004_v29 = vld [vmem:[#allocation2 + $0x8] sm:$0xff]  ;;  %4160 = vst [vmem:[#allocation18_spill] sm:$0xff] %v3010_v31  ;;  %v3016_v33 = vld [vmem:[#allocation2 + $0x30] sm:$0xff] }
 0x148   : > { %2330 = vmatprep.subr.bf16.mxu0 %v2701_v9  ;;  %2431 = vset.pattern.permute.xlu0 %v2702_v12  ;;  %4158 = vst [vmem:[#allocation16_spill] sm:$0xff] %v3004_v29  ;;  %v3014_v32 = vld [vmem:[#allocation2 + $0x68] sm:$0xff]  ;;  %4162 = vst [vmem:[#allocation20_spill] sm:$0xff] %v3016_v33  ;;  %v3020_v34 = vld [vmem:[#allocation2 + $0x78] sm:$0xff] }
 0x149   : > { %901 = vperm.xlu0 %2431, %v2994_v26   ;;  %4161 = vst [vmem:[#allocation19_spill] sm:$0xff] %v3014_v32  ;;  %4163 = vst [vmem:[#allocation21_spill] sm:$0xff] %v3020_v34  ;;  %v3024_v35 = vld [vmem:[#allocation2 + $0x50] sm:$0xff]  ;;  %v3029_v36 = vld [vmem:[#allocation2 + $0x60] sm:$0xff] }
 0x14a   : > { %4164 = vst [vmem:[#allocation22_spill] sm:$0xff] %v3024_v35  ;;  %4165 = vst [vmem:[#allocation23_spill] sm:$0xff] %v3029_v36  ;;  %v3033_v37 = vld [vmem:[#allocation2 + $0x70] sm:$0xff]  ;;  %v3078_v61 = vld [vmem:[%s2883_s14] sm:$0xff]  }
 0x14b   : > { %2331 = vmatpush3.bf16.msra.mxu0 %v773_v20  ;;  %926 = vperm.xlu1 %2428, %v2988_v23   ;;  %4166 = vst [vmem:[#allocation24_spill] sm:$0xff] %v3033_v37  ;;  %v4079_v3 = vunpack.c.h.bf16 %v3078_v61  ;;  %v4084_v5 = vunpack.c.l.bf16 %v3078_v61  ;;  %v3090_v7 = vld [vmem:[%s2883_s14 + $0x10] sm:$0xff]   ;;  %v3093_v8 = vld [vmem:[%s2883_s14 + $0x8] sm:$0xff]  }
 0x14c   : > { %2332 = vmatprep.subr.bf16.mxu0 %v2701_v9  ;;  %v4078_v15 = vunpack.c.l.bf16 %v3090_v7  ;;  %v4081_v16 = vunpack.c.l.bf16 %v3093_v8  ;;  %v4080_v54 = vunpack.c.h.bf16 %v3093_v8 }
 0x14d   : > { %906 = vperm.xlu0 %2431, %v3004_v29  }
 0x14f   : > { %2333 = vmatpush3.bf16.msra.mxu0 %v774_v24  ;;  %936 = vperm.xlu1 %2428, %v2992_v25  }
 0x151   : > { %921 = vperm.xlu0 %2431, %v3010_v31  }
 0x152   : > { %2335 = vmatmul.mubr.msk.bf16.vlgmr.msra.gmra.mrb[0].mxu0 %vm775_vm3, %v762_v27 }
 0x153   : > { %946 = vperm.xlu1 %2428, %v3002_v28  }
 0x155   : > { %931 = vperm.xlu0 %2431, %v3016_v33  }
 0x157   : > { %956 = vperm.xlu1 %2428, %v3008_v30  }
 0x159   : > { %941 = vperm.xlu0 %2431, %v2983_v19  }
 0x15b   : > { %966 = vperm.xlu1 %2428, %v3014_v32  }
 0x15d   : > { %951 = vperm.xlu0 %2431, %v3024_v35  }
 0x15f   : > { %976 = vperm.xlu1 %2428, %v3020_v34  }
 0x161   : > { %961 = vperm.xlu0 %2431, %v3029_v36  }
 0x163   : > { %2429 = vset.pattern.permute.xlu1 %v4075_v14 }
 0x164   : > { %1320 = vperm.xlu1 %2429, %v2994_v26  }
 0x165   : > { %971 = vperm.xlu0 %2431, %v3033_v37  }
 0x168   : > { %1324 = vperm.xlu1 %2429, %v3004_v29  }
 0x16c   : > { %1328 = vperm.xlu1 %2429, %v2975_v13   ;;  %v3431_v13 = vld [vmem:[#allocation3 + $0x58] sm:$0xff] }
 0x170   : > { %1332 = vperm.xlu1 %2429, %v2981_v18   ;;  %v3429_v18 = vld [vmem:[#allocation3 + $0x70] sm:$0xff] }
 0x174   : > { %1336 = vperm.xlu1 %2429, %v3010_v31  }
 0x178   : > { %1340 = vperm.xlu1 %2429, %v2988_v23  }
 0x17c   : > { %1344 = vperm.xlu1 %2429, %v3016_v33   ;;  %v3415_v33 = vld [vmem:[#allocation3 + $0x48] sm:$0xff] }
 0x180   : > { %1348 = vperm.xlu1 %2429, %v2992_v25   ;;  %v3413_v25 = vld [vmem:[#allocation3 + $0x60] sm:$0xff] }
 0x184   : > { %1356 = vperm.xlu1 %2429, %v3002_v28  }
 0x188   : > { %1360 = vperm.xlu1 %2429, %v3024_v35   ;;  %v3399_v35 = vld [vmem:[#allocation3 + $0x38] sm:$0xff] }
 0x18c   : > { %1364 = vperm.xlu1 %2429, %v3008_v30   ;;  %v3397_v30 = vld [vmem:[#allocation3 + $0x50] sm:$0xff] }
 0x190   : > { %1368 = vperm.xlu1 %2429, %v3029_v36  }
 0x194   : > { %1372 = vperm.xlu1 %2429, %v3014_v32  }
 0x198   : > { %1376 = vperm.xlu1 %2429, %v3033_v37   ;;  %v3383_v37 = vld [vmem:[#allocation3 + $0x28] sm:$0xff] }
 0x19c   : > { %1380 = vperm.xlu1 %2429, %v3020_v34  }
 0x1a0   : > { %2432 = vset.pattern.permute.xlu1 %v2702_v12 }
 0x1c2   : > { %v912_v38 = vpop.permute.xlu1 %911 }
 0x1c3   : > { %v3060_v46 = vpop.permute.xlu0 %1352 }
 0x1c6   : > { %v917_v39 = vpop.permute.xlu1 %916 }
 0x1c8   : > { %v902_v48 = vpop.permute.xlu0 %901 }
 0x1ca   : > { %v927_v40 = vpop.permute.xlu1 %926 }
 0x1cc   : > { %v907_v50 = vpop.permute.xlu0 %906 }
 0x1ce   : > { %v3050_v41 = vpop.permute.xlu1 %936 }
 0x1d0   : > { %v922_v52 = vpop.permute.xlu0 %921 }
 0x1d2   : > { %v3052_v42 = vpop.permute.xlu1 %946 }
 0x1d4   : > { %v932_v56 = vpop.permute.xlu0 %931 }
 0x1d6   : > { %v3054_v43 = vpop.permute.xlu1 %956 }
 0x1d8   : > { %v942_v59 = vpop.permute.xlu0 %941 }
 0x1da   : > { %v3056_v44 = vpop.permute.xlu1 %966 }
 0x1dc   : > { %v952_v22 = vpop.permute.xlu0 %951 }
 0x1de   : > { %v3058_v45 = vpop.permute.xlu1 %976 }
 0x1e3   : > { %v3062_v47 = vpop.permute.xlu1 %1320 }
 0x1e7   : > { %v3064_v49 = vpop.permute.xlu1 %1324 }
 0x1eb   : > { %v3066_v51 = vpop.permute.xlu1 %1328 }
 0x1ef   : > { %v3068_v53 = vpop.permute.xlu1 %1332 }
 0x1f3   : > { %v3072_v57 = vpop.permute.xlu1 %1336 }
 0x1f7   : > { %v3080_v62 = vpop.permute.xlu1 %1340 }
 0x1fb   : > { %v3101_v21 = vpop.permute.xlu1 %1344 }
 0x225   : > { %v3075_v60 = vpop.f32.mrb[0].mxu0 }
 0x226   : > { %v3083_v63 = vrot.slane %v3075_v60, %v981_v58  ;;  %v2336_v0 = vpop.f32.mrb[1].mxu0 }
 0x227   : > { %v816_v1 = vpop.f32.mrb[2].mxu0 }
 0x228   : > { %v2337_v2 = vpop.f32.mrb[3].mxu0  ;;  %v984_v4 = vadd.f32 %v3083_v63, %v907_v50  ;;  %v983_v6 = vadd.f32 %v3083_v63, %v902_v48  ;;  %v987_v9 = vadd.f32 %v3083_v63, %v922_v52  ;;  %v985_v10 = vadd.f32 %v3083_v63, %v912_v38  ;;  %v3112_v50 = vld [vmem:[%s2883_s14 + $0x18] sm:$0xff]   ;;  %v3127_v1 = vld [vmem:[%s2883_s14 + $0x20] sm:$0xff]  }
 0x229   : > { %v989_v17 = vadd.f32 %v3083_v63, %v932_v56  ;;  %v986_v20 = vadd.f32 %v3083_v63, %v917_v39  ;;  %v4077_v39 = vunpack.c.l.bf16 %v3112_v50  ;;  %v991_v2 = vadd.f32 %v3083_v63, %v942_v59 }
 0x22a   : > { %v1000_v11 = vmax.f32 %v984_v4, 0.0  ;;  %v999_v12 = vmax.f32 %v983_v6, 0.0  ;;  %v1003_v38 = vmax.f32 %v987_v9, 0.0  ;;  %v1001_v48 = vmax.f32 %v985_v10, 0.0  ;;  %v3131_v6 = vpop.permute.xlu1 %1348  ;;  %v962_v9 = vpop.permute.xlu0 %961 }
 0x22b   : > { %v1005_v52 = vmax.f32 %v989_v17, 0.0  ;;  %v1002_v56 = vmax.f32 %v986_v20, 0.0  ;;  %v988_v4 = vadd.f32 %v3083_v63, %v927_v40  ;;  %v4082_v59 = vunpack.c.l.bf16 %v3127_v1  ;;  %v3146_v20 = vld [vmem:[%s2883_s14 + $0x28] sm:$0xff]  }
 0x22c   : > { %v3105_v24 = vadd.f32 %v4079_v3, %v1000_v11  ;;  %v3109_v27 = vadd.f32 %v4084_v5, %v999_v12  ;;  %v3120_v58 = vadd.f32 %v4078_v15, %v1003_v38  ;;  %v3124_v0 = vadd.f32 %v4081_v16, %v1001_v48  ;;  %v3191_v5 = vld [vmem:[%s2883_s14 + $0x38] sm:$0xff]  }
 0x22d   : > { %v3137_v10 = vadd.f32 %v4077_v39, %v1005_v52  ;;  %v3141_v11 = vadd.f32 %v4080_v54, %v1002_v56  ;;  %v4083_v40 = vunpack.c.h.bf16 %v3090_v7  ;;  %v1007_v12 = vmax.f32 %v991_v2, 0.0  ;;  %v3157_v39 = vld [vmem:[%s2883_s14 + $0x30] sm:$0xff]  }
 0x22e   : > { %1033 = vmax.xlane.f32.xlu1 %v3105_v24  ;;  %1031 = vmax.xlane.f32.xlu0 %v3109_v27  ;;  %v1004_v17 = vmax.f32 %v988_v4, 0.0  ;;  %v993_v38 = vadd.f32 %v3083_v63, %v952_v22  ;;  %v990_v48 = vadd.f32 %v3083_v63, %v3050_v41  ;;  %v1385_v52 = vsub.s32 1, %v3070_v55  ;;  %v3162_v4 = vpop.permute.xlu1 %1356  ;;  %v972_v41 = vpop.permute.xlu0 %971 }
 0x22f   : > { %v4085_v56 = vunpack.c.l.bf16 %v3146_v20  ;;  %v4091_v14 = vunpack.c.h.bf16 %v3112_v50  ;;  %v995_v2 = vadd.f32 %v3083_v63, %v962_v9  ;;  %v992_v22 = vadd.f32 %v3083_v63, %v3052_v42 }
 0x230   : > { %v3166_v55 = vadd.f32 %v4082_v59, %v1007_v12  ;;  %v3170_v15 = vadd.f32 %v4083_v40, %v1004_v17  ;;  %v1009_v3 = vmax.f32 %v993_v38, 0.0  ;;  %v1006_v54 = vmax.f32 %v990_v48, 0.0 }
 0x231   : > { %v4086_v42 = vunpack.c.l.bf16 %v3157_v39  ;;  %v3176_v9 = vrot.slane %v3075_v60, %v1385_v52  ;;  %v997_v16 = vadd.f32 %v3083_v63, %v972_v41  ;;  %v4087_v12 = vunpack.c.h.bf16 %v3127_v1 }
 0x232   : > { %1039 = vmax.xlane.f32.xlu1 %v3120_v58  ;;  %1035 = vmax.xlane.f32.xlu0 %v3124_v0  ;;  %v994_v59 = vadd.f32 %v3083_v63, %v3054_v43  ;;  %v3184_v17 = vadd.f32 %v4085_v56, %v1009_v3  ;;  %v3188_v38 = vadd.f32 %v4091_v14, %v1006_v54  ;;  %v1011_v48 = vmax.f32 %v995_v2, 0.0  ;;  %v1361_v60 = vpop.permute.xlu1 %1360 }
 0x233   : > { %v1008_v40 = vmax.f32 %v992_v22, 0.0  ;;  %v1013_v52 = vmax.f32 %v997_v16, 0.0  ;;  %v4088_v43 = vunpack.c.l.bf16 %v3191_v5  ;;  %v4089_v41 = vunpack.c.h.bf16 %v3146_v20 }
 0x234   : > { %v1387_v3 = vadd.f32 %v3176_v9, %v3062_v47  ;;  %v3201_v54 = vadd.f32 %v4086_v42, %v1011_v48  ;;  %v1010_v22 = vmax.f32 %v994_v59, 0.0  ;;  %v996_v56 = vadd.f32 %v3083_v63, %v3056_v44 }
 0x235   : > { %v3205_v2 = vadd.f32 %v4087_v12, %v1008_v40  ;;  %v3213_v16 = vadd.f32 %v4088_v43, %v1013_v52  ;;  %v4090_v48 = vunpack.c.h.bf16 %v3157_v39  ;;  %v1389_v44 = vadd.f32 %v3176_v9, %v3066_v51 }
 0x236   : > { %1043 = vmax.xlane.f32.xlu1 %v3137_v10  ;;  %1037 = vmax.xlane.f32.xlu0 %v3141_v11  ;;  %v1403_v47 = vmax.f32 %v1387_v3, 0.0  ;;  %v1365_v42 = vpop.permute.xlu1 %1364  ;;  %v3218_v40 = vadd.f32 %v4089_v41, %v1010_v22  ;;  %v1012_v59 = vmax.f32 %v996_v56, 0.0  ;;  %v998_v12 = vadd.f32 %v3083_v63, %v3058_v45 }
 0x237   : > { %v4167_v52 = vunpack.c.l.bf16 %v3078_v61  ;;  %v2277_v43 = vunpack.c.h.bf16 %v3191_v5  ;;  %v1390_v22 = vadd.f32 %v3176_v9, %v3068_v53  ;;  %v1405_v51 = vmax.f32 %v1389_v44, 0.0 }
 0x238   : > { %v3235_v56 = vadd.f32 %v4090_v48, %v1012_v59  ;;  %v1014_v41 = vmax.f32 %v998_v12, 0.0  ;;  %v1388_v45 = vadd.f32 %v3176_v9, %v3064_v49  ;;  %v1392_v53 = vadd.f32 %v3176_v9, %v3080_v62 }
 0x239   : > { %v3228_v3 = vadd.f32 %v4167_v52, %v1403_v47  ;;  %v1391_v47 = vadd.f32 %v3176_v9, %v3072_v57  ;;  %v4168_v52 = vunpack.c.l.bf16 %v3093_v8  ;;  %v1406_v49 = vmax.f32 %v1390_v22, 0.0 }
 0x23a   : > { %1047 = vmax.xlane.f32.xlu1 %v3166_v55  ;;  %1041 = vmax.xlane.f32.xlu0 %v3170_v15  ;;  %v1369_v63 = vpop.permute.xlu1 %1368  ;;  %v3251_v12 = vadd.f32 %v2277_v43, %v1014_v41  ;;  %v1404_v44 = vmax.f32 %v1388_v45, 0.0  ;;  %v1393_v57 = vadd.f32 %v3176_v9, %v3101_v21  ;;  %v4169_v62 = vunpack.c.h.bf16 %v3093_v8 }
 0x23b   : > { %v3247_v59 = vadd.f32 %v4168_v52, %v1405_v51  ;;  %v1407_v48 = vmax.f32 %v1391_v47, 0.0  ;;  %v4170_v51 = vunpack.c.h.bf16 %v3078_v61  ;;  %v1408_v41 = vmax.f32 %v1392_v53, 0.0 }
 0x23c   : > { %v3259_v34 = vadd.f32 %v4169_v62, %v1406_v49  ;;  %v1394_v22 = vadd.f32 %v3176_v9, %v3131_v6  ;;  %v4171_v45 = vunpack.c.l.bf16 %v3090_v7  ;;  %v1409_v47 = vmax.f32 %v1393_v57, 0.0 }
 0x23d   : > { %v3263_v52 = vadd.f32 %v4170_v51, %v1404_v44  ;;  %v4172_v8 = vunpack.c.h.bf16 %v3090_v7  ;;  %v1395_v53 = vadd.f32 %v3176_v9, %v3060_v46  ;;  %v1396_v6 = vadd.f32 %v3176_v9, %v3162_v4 }
 0x23e   : > { %1051 = vmax.xlane.f32.xlu1 %v3184_v17  ;;  %1045 = vmax.xlane.f32.xlu0 %v3188_v38  ;;  %v1373_v14 = vpop.permute.xlu1 %1372  ;;  %v3271_v21 = vadd.f32 %v4171_v45, %v1407_v48  ;;  %v1410_v61 = vmax.f32 %v1394_v22, 0.0  ;;  %v4173_v48 = vunpack.c.l.bf16 %v3112_v50  ;;  %v1397_v7 = vadd.f32 %v3176_v9, %v1361_v60 }
 0x23f   : > { %v3275_v49 = vadd.f32 %v4172_v8, %v1408_v41  ;;  %v4174_v57 = vunpack.c.h.bf16 %v3112_v50  ;;  %v1411_v41 = vmax.f32 %v1395_v53, 0.0  ;;  %v1412_v46 = vmax.f32 %v1396_v6, 0.0 }
 0x240   : > { %v3285_v62 = vadd.f32 %v4173_v48, %v1409_v47  ;;  %v1398_v22 = vadd.f32 %v3176_v9, %v1365_v42  ;;  %v1399_v4 = vadd.f32 %v3176_v9, %v1369_v63  ;;  %v1400_v45 = vadd.f32 %v3176_v9, %v1373_v14 }
 0x241   : > { %v3290_v51 = vadd.f32 %v4174_v57, %v1410_v61  ;;  %v4176_v8 = vunpack.c.l.bf16 %v3127_v1  ;;  %v4177_v50 = vunpack.c.h.bf16 %v3127_v1  ;;  %v1413_v53 = vmax.f32 %v1397_v7, 0.0 }
 0x242   : > { %1055 = vmax.xlane.f32.xlu1 %v3201_v54  ;;  %1049 = vmax.xlane.f32.xlu0 %v3205_v2  ;;  %v1377_v44 = vpop.permute.xlu1 %1376  ;;  %v1414_v6 = vmax.f32 %v1398_v22, 0.0  ;;  %v1415_v63 = vmax.f32 %v1399_v4, 0.0  ;;  %v4179_v14 = vunpack.c.l.bf16 %v3146_v20  ;;  %v4181_v57 = vunpack.c.h.bf16 %v3146_v20 }
 0x243   : > { %4175 = vst [vmem:[#allocation25_spill] sm:$0xff] %v3290_v51  ;;  %v3299_v60 = vadd.f32 %v4176_v8, %v1411_v41  ;;  %v3303_v61 = vadd.f32 %v4177_v50, %v1412_v46  ;;  %v1416_v1 = vmax.f32 %v1400_v45, 0.0  ;;  %v1401_v46 = vadd.f32 %v3176_v9, %v1377_v44  ;;  %v3341_v45 = vld [vmem:[#allocation3] sm:$0xff] }
 0x244   : > { %v3310_v48 = vadd.f32 %v4179_v14, %v1413_v53  ;;  %v3314_v41 = vadd.f32 %v4181_v57, %v1414_v6  ;;  %v4183_v22 = vunpack.c.l.bf16 %v3157_v39  ;;  %v4185_v4 = vunpack.c.h.bf16 %v3157_v39  ;;  %v3339_v39 = vld [vmem:[#allocation3 + $0x8] sm:$0xff]  ;;  %4190 = vst [vmem:[#allocation33_spill] sm:$0xff] %v3341_v45  ;;  %v3349_v14 = vld [vmem:[#allocation3 + $0x20] sm:$0xff] }
 0x245   : > { %4178 = vst [vmem:[#allocation26_spill] sm:$0xff] %v3303_v61  ;;  %v1417_v50 = vmax.f32 %v1401_v46, 0.0  ;;  %v4187_v20 = vunpack.c.l.bf16 %v3191_v5  ;;  %v3351_v5 = vld [vmem:[#allocation3 + $0x10] sm:$0xff] }
 0x246   : > { %1059 = vmax.xlane.f32.xlu1 %v3213_v16  ;;  %1053 = vmax.xlane.f32.xlu0 %v3218_v40  ;;  %v1381_v47 = vpop.permute.xlu1 %1380  ;;  %4180 = vst [vmem:[#allocation27_spill] sm:$0xff] %v3310_v48  ;;  %4182 = vst [vmem:[#allocation28_spill] sm:$0xff] %v3314_v41  ;;  %v3325_v8 = vadd.f32 %v4185_v4, %v1416_v1  ;;  %v3365_v4 = vld [vmem:[#allocation3 + $0x30] sm:$0xff] }
 0x247   : > { %v1402_v42 = vadd.f32 %v3176_v9, %v1381_v47  ;;  %v3321_v47 = vadd.f32 %v4183_v22, %v1415_v63  ;;  %v3331_v9 = vadd.f32 %v4187_v20, %v1417_v50  ;;  %v3367_v50 = vld [vmem:[#allocation3 + $0x18] sm:$0xff] }
 0x248   : > { %4186 = vst [vmem:[#allocation30_spill] sm:$0xff] %v3325_v8  ;;  %4193 = vst [vmem:[#allocation36_spill] sm:$0xff] %v3367_v50 }
 0x249   : > { %v1418_v7 = vmax.f32 %v1402_v42, 0.0  ;;  %4184 = vst [vmem:[#allocation29_spill] sm:$0xff] %v3321_v47  ;;  %4188 = vst [vmem:[#allocation31_spill] sm:$0xff] %v3331_v9 }
 0x24a   : > { %1435 = vmax.xlane.f32.xlu1 %v3228_v3  ;;  %1057 = vmax.xlane.f32.xlu0 %v3235_v56 }
 0x24b   : > { %v3335_v44 = vadd.f32 %v2277_v43, %v1418_v7  ;;  %v3381_v43 = vld [vmem:[#allocation3 + $0x40] sm:$0xff] }
 0x24d   : > { %4189 = vst [vmem:[#allocation32_spill] sm:$0xff] %v3335_v44 }
 0x24e   : > { %1439 = vmax.xlane.f32.xlu1 %v3247_v59  ;;  %1061 = vmax.xlane.f32.xlu0 %v3251_v12 }
 0x252   : > { %1441 = vmax.xlane.f32.xlu1 %v3259_v34  ;;  %1437 = vmax.xlane.f32.xlu0 %v3263_v52 }
 0x256   : > { %1443 = vmax.xlane.f32.xlu1 %v3271_v21  ;;  %1445 = vmax.xlane.f32.xlu0 %v3275_v49 }
 0x25a   : > { %1447 = vmax.xlane.f32.xlu1 %v3285_v62  ;;  %1449 = vmax.xlane.f32.xlu0 %v3290_v51 }
 0x25e   : > { %1451 = vmax.xlane.f32.xlu1 %v3299_v60  ;;  %1453 = vmax.xlane.f32.xlu0 %v3303_v61 }
 0x262   : > { %1455 = vmax.xlane.f32.xlu1 %v3310_v48  ;;  %1457 = vmax.xlane.f32.xlu0 %v3314_v41 }
 0x266   : > { %1459 = vmax.xlane.f32.xlu1 %v3321_v47  ;;  %1461 = vmax.xlane.f32.xlu0 %v3325_v8  ;;  %v4202_v47 = vmov 1  }
 0x26a   : > { %1463 = vmax.xlane.f32.xlu1 %v3331_v9  ;;  %1465 = vmax.xlane.f32.xlu0 %v3335_v44  ;;  %v3445_v44 = vld [vmem:[#allocation3 + $0x68] sm:$0xff]  ;;  %v3459_v9 = vld [vmem:[#allocation3 + $0x78] sm:$0xff] }
 0x26b   : > { %4199 = vst [vmem:[#allocation42_spill] sm:$0xff] %v3445_v44  ;;  %4201 = vst [vmem:[#allocation44_spill] sm:$0xff] %v3459_v9 }
 0x2bb   : > { %v1034_v53 = vpop.xlane.xlu1 %1033  ;;  %v1032_v6 = vpop.xlane.xlu0 %1031 }
 0x2bc   : > { %v3344_v42 = vmax.f32 %v3339_v39, %v1034_v53  ;;  %v3347_v63 = vmax.f32 %v3341_v45, %v1032_v6 }
 0x2be   : > { %4191 = vst [vmem:[#allocation34_spill] sm:$0xff] %v3347_v63  ;;  %1086 = vperm.xlu0 %2431, %v3344_v42   ;;  %1081 = vperm.xlu1 %2432, %v3347_v63  }
 0x2bf   : > { %v1040_v1 = vpop.xlane.xlu1 %1039  ;;  %v1036_v46 = vpop.xlane.xlu0 %1035 }
 0x2c0   : > { %v3360_v7 = vmax.f32 %v3349_v14, %v1040_v1  ;;  %v3363_v22 = vmax.f32 %v3351_v5, %v1036_v46 }
 0x2c2   : > { %4192 = vst [vmem:[#allocation35_spill] sm:$0xff] %v3363_v22  ;;  %1101 = vperm.xlu0 %2431, %v3360_v7   ;;  %1091 = vperm.xlu1 %2432, %v3363_v22  }
 0x2c3   : > { %v1044_v6 = vpop.xlane.xlu1 %1043  ;;  %v1038_v1 = vpop.xlane.xlu0 %1037 }
 0x2c4   : > { %v3376_v57 = vmax.f32 %v3365_v4, %v1044_v6  ;;  %v3379_v46 = vmax.f32 %v3367_v50, %v1038_v1 }
 0x2c6   : > { %4194 = vst [vmem:[#allocation37_spill] sm:$0xff] %v3379_v46  ;;  %1111 = vperm.xlu0 %2431, %v3376_v57   ;;  %1096 = vperm.xlu1 %2432, %v3379_v46  }
 0x2c7   : > { %v1048_v32 = vpop.xlane.xlu1 %1047  ;;  %v1042_v6 = vpop.xlane.xlu0 %1041 }
 0x2c8   : > { %v3392_v36 = vmax.f32 %v3381_v43, %v1048_v32  ;;  %v3395_v1 = vmax.f32 %v3383_v37, %v1042_v6 }
 0x2ca   : > { %4195 = vst [vmem:[#allocation38_spill] sm:$0xff] %v3395_v1  ;;  %1121 = vperm.xlu0 %2431, %v3392_v36   ;;  %1106 = vperm.xlu1 %2432, %v3395_v1  }
 0x2cb   : > { %v1052_v28 = vpop.xlane.xlu1 %1051  ;;  %v1046_v32 = vpop.xlane.xlu0 %1045 }
 0x2cc   : > { %v3408_v19 = vmax.f32 %v3397_v30, %v1052_v28  ;;  %v3411_v6 = vmax.f32 %v3399_v35, %v1046_v32 }
 0x2ce   : > { %4196 = vst [vmem:[#allocation39_spill] sm:$0xff] %v3411_v6  ;;  %1131 = vperm.xlu0 %2431, %v3408_v19   ;;  %1116 = vperm.xlu1 %2432, %v3411_v6  }
 0x2cf   : > { %v1056_v23 = vpop.xlane.xlu1 %1055  ;;  %v1050_v28 = vpop.xlane.xlu0 %1049 }
 0x2d0   : > { %v3424_v31 = vmax.f32 %v3413_v25, %v1056_v23  ;;  %v3427_v32 = vmax.f32 %v3415_v33, %v1050_v28 }
 0x2d2   : > { %4197 = vst [vmem:[#allocation40_spill] sm:$0xff] %v3427_v32  ;;  %1141 = vperm.xlu0 %2431, %v3424_v31   ;;  %1126 = vperm.xlu1 %2432, %v3427_v32  }
 0x2d3   : > { %v1060_v29 = vpop.xlane.xlu1 %1059  ;;  %v1054_v23 = vpop.xlane.xlu0 %1053 }
 0x2d4   : > { %v3440_v26 = vmax.f32 %v3429_v18, %v1060_v29  ;;  %v3443_v28 = vmax.f32 %v3431_v13, %v1054_v23 }
 0x2d6   : > { %4198 = vst [vmem:[#allocation41_spill] sm:$0xff] %v3443_v28  ;;  %1151 = vperm.xlu0 %2431, %v3440_v26   ;;  %1136 = vperm.xlu1 %2432, %v3443_v28  }
 0x2d7   : > { %v1436_v8 = vpop.xlane.xlu1 %1435  ;;  %v1058_v41 = vpop.xlane.xlu0 %1057 }
 0x2d8   : > { %v3454_v29 = vmax.f32 %v3341_v45, %v1436_v8  ;;  %v3457_v23 = vmax.f32 %v3445_v44, %v1058_v41 }
 0x2da   : > { %4200 = vst [vmem:[#allocation43_spill] sm:$0xff] %v3457_v23  ;;  %v1724_v53 = vsel %vm1723_vm4, %v3347_v63, %v3454_v29  ;;  %1146 = vperm.xlu1 %2432, %v3457_v23   ;;  %2434 = vset.pattern.permute.xlu0 %v4202_v47 }
 0x2db   : > { %1741 = vst.msk [vmem:[#allocation3] sm:$0xff] %vm1740_vm5, %v1724_v53  ;;  %v1440_v41 = vpop.xlane.xlu1 %1439  ;;  %v1062_v8 = vpop.xlane.xlu0 %1061 }
 0x2dc   : > { %v3472_v51 = vmax.f32 %v3351_v5, %v1440_v41  ;;  %v3475_v20 = vmax.f32 %v3459_v9, %v1062_v8 }
 0x2de   : > { %4203 = vst [vmem:[#allocation45_spill] sm:$0xff] %v3475_v20  ;;  %v1726_v61 = vsel %vm1723_vm4, %v3363_v22, %v3472_v51  ;;  %1156 = vperm.xlu1 %2432, %v3475_v20  }
 0x2df   : > { %1743 = vst.msk [vmem:[#allocation3 + $0x10] sm:$0xff] %vm1740_vm5, %v1726_v61  ;;  %v1442_v53 = vpop.xlane.xlu1 %1441  ;;  %v1438_v41 = vpop.xlane.xlu0 %1437 }
 0x2e0   : > { %v3487_v48 = vmax.f32 %v3367_v50, %v1442_v53  ;;  %v3490_v8 = vmax.f32 %v3339_v39, %v1438_v41 }
 0x2e2   : > { %v1727_v22 = vsel %vm1723_vm4, %v3379_v46, %v3487_v48  ;;  %2433 = vset.pattern.permute.xlu1 %v4202_v47  ;;  %1490 = vperm.xlu0 %2434, %v3490_v8   ;;  %v1725_v61 = vsel %vm1723_vm4, %v3344_v42, %v3490_v8 }
 0x2e3   : > { %1744 = vst.msk [vmem:[#allocation3 + $0x18] sm:$0xff] %vm1740_vm5, %v1727_v22  ;;  %v1444_v53 = vpop.xlane.xlu1 %1443  ;;  %1485 = vperm.xlu1 %2433, %v3454_v29   ;;  %v1446_v41 = vpop.xlane.xlu0 %1445  ;;  %1742 = vst.msk [vmem:[#allocation3 + $0x8] sm:$0xff] %vm1740_vm5, %v1725_v61 }
 0x2e4   : > { %v3508_v63 = vmax.f32 %v3349_v14, %v1444_v53  ;;  %v3511_v45 = vmax.f32 %v3383_v37, %v1446_v41 }
 0x2e6   : > { %4204 = vst [vmem:[#allocation46_spill] sm:$0xff] %v3508_v63  ;;  %v1728_v22 = vsel %vm1723_vm4, %v3360_v7, %v3508_v63  ;;  %1505 = vperm.xlu0 %2434, %v3508_v63   ;;  %v1729_v61 = vsel %vm1723_vm4, %v3395_v1, %v3511_v45 }
 0x2e7   : > { %1745 = vst.msk [vmem:[#allocation3 + $0x20] sm:$0xff] %vm1740_vm5, %v1728_v22  ;;  %v1448_v53 = vpop.xlane.xlu1 %1447  ;;  %1495 = vperm.xlu1 %2433, %v3472_v51   ;;  %v1450_v41 = vpop.xlane.xlu0 %1449  ;;  %1746 = vst.msk [vmem:[#allocation3 + $0x28] sm:$0xff] %vm1740_vm5, %v1729_v61 }
 0x2e8   : > { %v3528_v47 = vmax.f32 %v3365_v4, %v1448_v53  ;;  %v3531_v50 = vmax.f32 %v3399_v35, %v1450_v41 }
 0x2ea   : > { %4205 = vst [vmem:[#allocation47_spill] sm:$0xff] %v3528_v47  ;;  %v1730_v22 = vsel %vm1723_vm4, %v3376_v57, %v3528_v47  ;;  %1515 = vperm.xlu0 %2434, %v3528_v47   ;;  %v1731_v61 = vsel %vm1723_vm4, %v3411_v6, %v3531_v50 }
 0x2eb   : > { %1747 = vst.msk [vmem:[#allocation3 + $0x30] sm:$0xff] %vm1740_vm5, %v1730_v22  ;;  %v1452_v53 = vpop.xlane.xlu1 %1451  ;;  %1500 = vperm.xlu1 %2433, %v3487_v48   ;;  %v1454_v41 = vpop.xlane.xlu0 %1453  ;;  %1748 = vst.msk [vmem:[#allocation3 + $0x38] sm:$0xff] %vm1740_vm5, %v1731_v61 }
 0x2ec   : > { %v3548_v46 = vmax.f32 %v3381_v43, %v1452_v53  ;;  %v3551_v1 = vmax.f32 %v3415_v33, %v1454_v41 }
 0x2ee   : > { %4206 = vst [vmem:[#allocation48_spill] sm:$0xff] %v3548_v46  ;;  %4207 = vst [vmem:[#allocation49_spill] sm:$0xff] %v3551_v1  ;;  %v1732_v22 = vsel %vm1723_vm4, %v3392_v36, %v3548_v46  ;;  %1525 = vperm.xlu0 %2434, %v3548_v46   ;;  %v1733_v61 = vsel %vm1723_vm4, %v3427_v32, %v3551_v1 }
 0x2ef   : > { %1749 = vst.msk [vmem:[#allocation3 + $0x40] sm:$0xff] %vm1740_vm5, %v1732_v22  ;;  %v1456_v53 = vpop.xlane.xlu1 %1455  ;;  %1510 = vperm.xlu1 %2433, %v3511_v45   ;;  %v1458_v41 = vpop.xlane.xlu0 %1457  ;;  %1750 = vst.msk [vmem:[#allocation3 + $0x48] sm:$0xff] %vm1740_vm5, %v1733_v61 }
 0x2f0   : > { %v3568_v63 = vmax.f32 %v3397_v30, %v1456_v53  ;;  %v3571_v6 = vmax.f32 %v3431_v13, %v1458_v41 }
 0x2f2   : > { %4208 = vst [vmem:[#allocation50_spill] sm:$0xff] %v3568_v63  ;;  %4209 = vst [vmem:[#allocation51_spill] sm:$0xff] %v3571_v6  ;;  %v1734_v22 = vsel %vm1723_vm4, %v3408_v19, %v3568_v63  ;;  %1535 = vperm.xlu0 %2434, %v3568_v63   ;;  %v1735_v61 = vsel %vm1723_vm4, %v3443_v28, %v3571_v6 }
 0x2f3   : > { %1751 = vst.msk [vmem:[#allocation3 + $0x50] sm:$0xff] %vm1740_vm5, %v1734_v22  ;;  %v1460_v53 = vpop.xlane.xlu1 %1459  ;;  %1520 = vperm.xlu1 %2433, %v3531_v50   ;;  %v1462_v41 = vpop.xlane.xlu0 %1461  ;;  %1752 = vst.msk [vmem:[#allocation3 + $0x58] sm:$0xff] %vm1740_vm5, %v1735_v61 }
 0x2f4   : > { %v3588_v47 = vmax.f32 %v3413_v25, %v1460_v53  ;;  %v3591_v32 = vmax.f32 %v3445_v44, %v1462_v41 }
 0x2f6   : > { %4210 = vst [vmem:[#allocation52_spill] sm:$0xff] %v3588_v47  ;;  %4211 = vst [vmem:[#allocation53_spill] sm:$0xff] %v3591_v32  ;;  %v1736_v22 = vsel %vm1723_vm4, %v3424_v31, %v3588_v47  ;;  %1545 = vperm.xlu0 %2434, %v3588_v47   ;;  %v1737_v61 = vsel %vm1723_vm4, %v3457_v23, %v3591_v32 }
 0x2f7   : > { %1753 = vst.msk [vmem:[#allocation3 + $0x60] sm:$0xff] %vm1740_vm5, %v1736_v22  ;;  %v1464_v53 = vpop.xlane.xlu1 %1463  ;;  %1530 = vperm.xlu1 %2433, %v3551_v1   ;;  %v1466_v41 = vpop.xlane.xlu0 %1465  ;;  %1754 = vst.msk [vmem:[#allocation3 + $0x68] sm:$0xff] %vm1740_vm5, %v1737_v61 }
 0x2f8   : > { %v3608_v46 = vmax.f32 %v3429_v18, %v1464_v53  ;;  %v3611_v28 = vmax.f32 %v3459_v9, %v1466_v41 }
 0x2fa   : > { %4212 = vst [vmem:[#allocation54_spill] sm:$0xff] %v3608_v46  ;;  %4213 = vst [vmem:[#allocation55_spill] sm:$0xff] %v3611_v28  ;;  %v1738_v22 = vsel %vm1723_vm4, %v3440_v26, %v3608_v46  ;;  %1555 = vperm.xlu0 %2434, %v3608_v46   ;;  %v1739_v61 = vsel %vm1723_vm4, %v3475_v20, %v3611_v28 }
 0x2fb   : > { %1755 = vst.msk [vmem:[#allocation3 + $0x70] sm:$0xff] %vm1740_vm5, %v1738_v22  ;;  %1540 = vperm.xlu1 %2433, %v3571_v6   ;;  %1756 = vst.msk [vmem:[#allocation3 + $0x78] sm:$0xff] %vm1740_vm5, %v1739_v61 }
 0x2ff   : > { %1550 = vperm.xlu1 %2433, %v3591_v32  }
 0x303   : > { %1560 = vperm.xlu1 %2433, %v3611_v28  }
 0x33d   : > { %v1082_v53 = vpop.permute.xlu1 %1081  ;;  %v1087_v41 = vpop.permute.xlu0 %1086 }
 0x33e   : > { %v1159_v47 = vsub.f32 %v3109_v27, %v1082_v53  ;;  %v1160_v63 = vsub.f32 %v3105_v24, %v1087_v41 }
 0x340   : > { %v1175_v9 = vmul.f32 1.442695, %v1159_v47  ;;  %v1177_v22 = vmul.f32 1.442695, %v1160_v63 }
 0x341   : > { %v1092_v46 = vpop.permute.xlu1 %1091  ;;  %v1102_v23 = vpop.permute.xlu0 %1101 }
 0x342   : > { %2435 = vpow2.f32 %v1175_v9  ;;  %v1161_v20 = vsub.f32 %v3124_v0, %v1092_v46  ;;  %v1163_v6 = vsub.f32 %v3120_v58, %v1102_v23 }
 0x343   : > { %2437 = vpow2.f32 %v1177_v22 }
 0x344   : > { %v1179_v61 = vmul.f32 1.442695, %v1161_v20  ;;  %v1183_v32 = vmul.f32 1.442695, %v1163_v6 }
 0x345   : > { %v1097_v44 = vpop.permute.xlu1 %1096  ;;  %v1112_v28 = vpop.permute.xlu0 %1111 }
 0x346   : > { %2439 = vpow2.f32 %v1179_v61  ;;  %v1162_v1 = vsub.f32 %v3141_v11, %v1097_v44  ;;  %v1165_v24 = vsub.f32 %v3137_v10, %v1112_v28 }
 0x347   : > { %2441 = vpow2.f32 %v1183_v32 }
 0x348   : > { %v1181_v27 = vmul.f32 1.442695, %v1162_v1  ;;  %v1187_v23 = vmul.f32 1.442695, %v1165_v24 }
 0x349   : > { %v1107_v63 = vpop.permute.xlu1 %1106  ;;  %v1122_v47 = vpop.permute.xlu0 %1121 }
 0x34a   : > { %2443 = vpow2.f32 %v1181_v27  ;;  %v1164_v9 = vsub.f32 %v3170_v15, %v1107_v63  ;;  %v1167_v20 = vsub.f32 %v3166_v55, %v1122_v47 }
 0x34c   : > { %v2436_v0 = vpop.eup %2435  ;;  %v1185_v46 = vmul.f32 1.442695, %v1164_v9  ;;  %v1191_v32 = vmul.f32 1.442695, %v1167_v20 }
 0x34d   : > { %v2438_v58 = vpop.eup %2437  ;;  %v1117_v6 = vpop.permute.xlu1 %1116  ;;  %1207 = vadd.xlane.f32.xlu0 %v2436_v0 }
 0x34e   : > { %v1132_v53 = vpop.permute.xlu0 %1131  ;;  %2445 = vpow2.f32 %v1185_v46  ;;  %v1166_v11 = vsub.f32 %v3188_v38, %v1117_v6  ;;  %1209 = vadd.xlane.f32.xlu1 %v2438_v58 }
 0x34f   : > { %2447 = vpow2.f32 %v1187_v23  ;;  %v1169_v15 = vsub.f32 %v3184_v17, %v1132_v53 }
 0x350   : > { %v2440_v44 = vpop.eup %2439  ;;  %v1189_v10 = vmul.f32 1.442695, %v1166_v11 }
 0x351   : > { %v2442_v1 = vpop.eup %2441  ;;  %v1127_v28 = vpop.permute.xlu1 %1126  ;;  %1211 = vadd.xlane.f32.xlu0 %v2440_v44  ;;  %v1195_v27 = vmul.f32 1.442695, %v1169_v15 }
 0x352   : > { %v1142_v41 = vpop.permute.xlu0 %1141  ;;  %2449 = vpow2.f32 %v1189_v10  ;;  %v1168_v55 = vsub.f32 %v3205_v2, %v1127_v28  ;;  %1215 = vadd.xlane.f32.xlu1 %v2442_v1 }
 0x353   : > { %2451 = vpow2.f32 %v1191_v32  ;;  %v1171_v38 = vsub.f32 %v3201_v54, %v1142_v41 }
 0x354   : > { %v2444_v22 = vpop.eup %2443  ;;  %v1193_v61 = vmul.f32 1.442695, %v1168_v55 }
 0x355   : > { %v1137_v24 = vpop.permute.xlu1 %1136  ;;  %1213 = vadd.xlane.f32.xlu0 %v2444_v22  ;;  %v1199_v0 = vmul.f32 1.442695, %v1171_v38 }
 0x356   : > { %2453 = vpow2.f32 %v1193_v61  ;;  %v1170_v63 = vsub.f32 %v3218_v40, %v1137_v24  ;;  %v1152_v47 = vpop.permute.xlu0 %1151 }
 0x357   : > { %2455 = vpow2.f32 %v1195_v27  ;;  %v1173_v46 = vsub.f32 %v3213_v16, %v1152_v47 }
 0x358   : > { %v2446_v17 = vpop.eup %2445  ;;  %v1197_v9 = vmul.f32 1.442695, %v1170_v63 }
 0x359   : > { %v1147_v2 = vpop.permute.xlu1 %1146  ;;  %1217 = vadd.xlane.f32.xlu0 %v2446_v17  ;;  %v2448_v23 = vpop.eup %2447  ;;  %v1203_v6 = vmul.f32 1.442695, %v1173_v46 }
 0x35a   : > { %2457 = vpow2.f32 %v1197_v9  ;;  %v1172_v58 = vsub.f32 %v3235_v56, %v1147_v2 }
 0x35b   : > { %2459 = vpow2.f32 %v1199_v0 }
 0x35c   : > { %v2450_v20 = vpop.eup %2449  ;;  %v1201_v54 = vmul.f32 1.442695, %v1172_v58 }
 0x35d   : > { %v1157_v53 = vpop.permute.xlu1 %1156  ;;  %1221 = vadd.xlane.f32.xlu1 %v2450_v20  ;;  %1219 = vadd.xlane.f32.xlu0 %v2448_v23  ;;  %v2452_v11 = vpop.eup %2451 }
 0x35e   : > { %2461 = vpow2.f32 %v1201_v54  ;;  %v1174_v40 = vsub.f32 %v3251_v12, %v1157_v53 }
 0x35f   : > { %2463 = vpow2.f32 %v1203_v6 }
 0x360   : > { %v2454_v44 = vpop.eup %2453  ;;  %v1205_v10 = vmul.f32 1.442695, %v1174_v40  ;;  %v4214_v40 = vld [vmem:[#allocation27_spill] sm:$0xff] }
 0x361   : > { %1225 = vadd.xlane.f32.xlu1 %v2454_v44  ;;  %1223 = vadd.xlane.f32.xlu0 %v2452_v11  ;;  %v1491_v16 = vpop.permute.xlu0 %1490  ;;  %v2456_v32 = vpop.eup %2455 }
 0x362   : > { %2465 = vpow2.f32 %v1205_v10  ;;  %v1564_v56 = vsub.f32 %v3263_v52, %v1491_v16  ;;  %v1486_v1 = vpop.permute.xlu1 %1485  ;;  %v4215_v10 = vld [vmem:[#allocation25_spill] sm:$0xff] }
 0x363   : > { %v1563_v15 = vsub.f32 %v3228_v3, %v1486_v1 }
 0x364   : > { %v2458_v28 = vpop.eup %2457  ;;  %v1581_v41 = vmul.f32 1.442695, %v1564_v56 }
 0x365   : > { %v1579_v55 = vmul.f32 1.442695, %v1563_v15  ;;  %1229 = vadd.xlane.f32.xlu1 %v2458_v28  ;;  %1227 = vadd.xlane.f32.xlu0 %v2456_v32  ;;  %v1506_v12 = vpop.permute.xlu0 %1505  ;;  %v2460_v27 = vpop.eup %2459 }
 0x366   : > { %2467 = vpow2.f32 %v1581_v41  ;;  %v1567_v22 = vsub.f32 %v3271_v21, %v1506_v12  ;;  %v1496_v61 = vpop.permute.xlu1 %1495  ;;  %v4217_v41 = vld [vmem:[#allocation26_spill] sm:$0xff] }
 0x367   : > { %2469 = vpow2.f32 %v1579_v55  ;;  %v1565_v38 = vsub.f32 %v3247_v59, %v1496_v61 }
 0x368   : > { %v2462_v24 = vpop.eup %2461  ;;  %v1587_v3 = vmul.f32 1.442695, %v1567_v22 }
 0x369   : > { %v1583_v52 = vmul.f32 1.442695, %v1565_v38  ;;  %1233 = vadd.xlane.f32.xlu1 %v2462_v24  ;;  %1231 = vadd.xlane.f32.xlu0 %v2460_v27  ;;  %v1516_v63 = vpop.permute.xlu0 %1515  ;;  %v2464_v9 = vpop.eup %2463  ;;  %v4218_v24 = vld [vmem:[#allocation31_spill] sm:$0xff] }
 0x36a   : > { %v1569_v47 = vsub.f32 %v3285_v62, %v1516_v63  ;;  %v1501_v17 = vpop.permute.xlu1 %1500 }
 0x36b   : > { %2471 = vpow2.f32 %v1583_v52  ;;  %v1566_v0 = vsub.f32 %v3259_v34, %v1501_v17 }
 0x36c   : > { %v2466_v46 = vpop.eup %2465  ;;  %2473 = vpow2.f32 %v1587_v3  ;;  %v1591_v59 = vmul.f32 1.442695, %v1569_v47  ;;  %v4219_v3 = vld [vmem:[#allocation28_spill] sm:$0xff] }
 0x36d   : > { %v1585_v21 = vmul.f32 1.442695, %v1566_v0  ;;  %1237 = vadd.xlane.f32.xlu1 %v2466_v46  ;;  %1235 = vadd.xlane.f32.xlu0 %v2464_v9  ;;  %v1526_v2 = vpop.permute.xlu0 %1525 }
 0x36e   : > { %v1571_v58 = vsub.f32 %v3299_v60, %v1526_v2  ;;  %v1511_v23 = vpop.permute.xlu1 %1510  ;;  %v4220_v2 = vld [vmem:[#allocation30_spill] sm:$0xff] }
 0x36f   : > { %2475 = vpow2.f32 %v1585_v21  ;;  %v1568_v20 = vsub.f32 %v3275_v49, %v1511_v23  ;;  %v4216_v49 = vld [vmem:[#allocation29_spill] sm:$0xff] }
 0x370   : > { %v2468_v54 = vpop.eup %2467  ;;  %2477 = vpow2.f32 %v1591_v59  ;;  %v1595_v34 = vmul.f32 1.442695, %v1571_v58 }
 0x371   : > { %v2470_v62 = vpop.eup %2469  ;;  %v1589_v6 = vmul.f32 1.442695, %v1568_v20  ;;  %1613 = vadd.xlane.f32.xlu1 %v2468_v54  ;;  %v1536_v53 = vpop.permute.xlu0 %1535 }
 0x372   : > { %v1573_v11 = vsub.f32 %v4214_v40, %v1536_v53  ;;  %v1521_v44 = vpop.permute.xlu1 %1520  ;;  %1611 = vadd.xlane.f32.xlu0 %v2470_v62  ;;  %v4221_v62 = vld [vmem:[#allocation32_spill] sm:$0xff] }
 0x373   : > { %2479 = vpow2.f32 %v1589_v6  ;;  %v1570_v16 = vsub.f32 %v4215_v10, %v1521_v44 }
 0x374   : > { %2481 = vpow2.f32 %v1595_v34  ;;  %v1599_v32 = vmul.f32 1.442695, %v1573_v11 }
 0x375   : > { %v2472_v56 = vpop.eup %2471  ;;  %v1593_v60 = vmul.f32 1.442695, %v1570_v16  ;;  %v1546_v1 = vpop.permute.xlu0 %1545 }
 0x376   : > { %v1575_v15 = vsub.f32 %v4216_v49, %v1546_v1  ;;  %v1531_v28 = vpop.permute.xlu1 %1530  ;;  %1615 = vadd.xlane.f32.xlu0 %v2472_v56  ;;  %v2474_v12 = vpop.eup %2473 }
 0x377   : > { %2483 = vpow2.f32 %v1593_v60  ;;  %v1572_v55 = vsub.f32 %v4217_v41, %v1531_v28  ;;  %v4222_v41 = vsub.f32 %v3339_v39, %v3344_v42 }
 0x378   : > { %2485 = vpow2.f32 %v1599_v32  ;;  %v1603_v38 = vmul.f32 1.442695, %v1575_v15 }
 0x379   : > { %v2476_v22 = vpop.eup %2475  ;;  %v1597_v61 = vmul.f32 1.442695, %v1572_v55  ;;  %v1556_v27 = vpop.permute.xlu0 %1555  ;;  %v1257_v55 = vmul.f32 1.442695, %v4222_v41 }
 0x37a   : > { %v1577_v52 = vsub.f32 %v4218_v24, %v1556_v27  ;;  %v1541_v63 = vpop.permute.xlu1 %1540  ;;  %1617 = vadd.xlane.f32.xlu1 %v2476_v22  ;;  %1619 = vadd.xlane.f32.xlu0 %v2474_v12  ;;  %v2478_v17 = vpop.eup %2477  ;;  %v4223_v12 = vld [vmem:[#allocation33_spill] sm:$0xff]  ;;  %v4224_v22 = vld [vmem:[#allocation34_spill] sm:$0xff] }
 0x37b   : > { %2487 = vpow2.f32 %v1597_v61  ;;  %v1574_v47 = vsub.f32 %v4219_v3, %v1541_v63  ;;  %v4225_v61 = vsub.f32 %v4223_v12, %v4224_v22  ;;  %v4227_v3 = vsub.f32 %v3339_v39, %v3490_v8  ;;  %v4232_v8 = vld [vmem:[#allocation36_spill] sm:$0xff] }
 0x37c   : > { %2489 = vpow2.f32 %v1603_v38  ;;  %v1607_v46 = vmul.f32 1.442695, %v1577_v52  ;;  %v4226_v52 = vsub.f32 %v3349_v14, %v3360_v7  ;;  %v4228_v42 = vsub.f32 %v4223_v12, %v3454_v29  ;;  %v4243_v12 = vld [vmem:[#allocation39_spill] sm:$0xff] }
 0x37d   : > { %v2480_v9 = vpop.eup %2479  ;;  %v1601_v0 = vmul.f32 1.442695, %v1574_v47  ;;  %v1255_v27 = vmul.f32 1.442695, %v4225_v61  ;;  %v1661_v47 = vmul.f32 1.442695, %v4227_v3  ;;  %v4231_v7 = vsub.f32 %v3365_v4, %v3376_v57 }
 0x37e   : > { %v1551_v21 = vpop.permute.xlu1 %1550  ;;  %1621 = vadd.xlane.f32.xlu1 %v2480_v9  ;;  %1623 = vadd.xlane.f32.xlu0 %v2478_v17  ;;  %v2482_v58 = vpop.eup %2481  ;;  %v1263_v63 = vmul.f32 1.442695, %v4226_v52  ;;  %v1659_v17 = vmul.f32 1.442695, %v4228_v42  ;;  %v4229_v9 = vld [vmem:[#allocation35_spill] sm:$0xff]  ;;  %v4235_v29 = vsub.f32 %v3351_v5, %v3472_v51  ;;  %v4237_v57 = vld [vmem:[#allocation38_spill] sm:$0xff]  ;;  %v4248_v42 = vsub.f32 %v3413_v25, %v3424_v31 }
 0x37f   : > { %2491 = vpow2.f32 %v1601_v0  ;;  %v1576_v59 = vsub.f32 %v4220_v2, %v1551_v21  ;;  %v4230_v0 = vsub.f32 %v3351_v5, %v4229_v9  ;;  %v1267_v39 = vmul.f32 1.442695, %v4231_v7  ;;  %v4240_v5 = vld [vmem:[#allocation46_spill] sm:$0xff] }
 0x380   : > { %2493 = vpow2.f32 %v1607_v46  ;;  %v884_v9 = vld [vmem:[#allocation4 + $0x8] sm:$0xff] }
 0x381   : > { %v2484_v23 = vpop.eup %2483  ;;  %v1605_v20 = vmul.f32 1.442695, %v1576_v59  ;;  %v1259_v46 = vmul.f32 1.442695, %v4230_v0  ;;  %v4233_v59 = vld [vmem:[#allocation37_spill] sm:$0xff] }
 0x382   : > { %v1561_v54 = vpop.permute.xlu1 %1560  ;;  %1625 = vadd.xlane.f32.xlu1 %v2484_v23  ;;  %1627 = vadd.xlane.f32.xlu0 %v2482_v58  ;;  %v2486_v53 = vpop.eup %2485  ;;  %v4234_v58 = vsub.f32 %v4232_v8, %v4233_v59  ;;  %v4251_v59 = vsub.f32 %v3399_v35, %v3531_v50 }
 0x383   : > { %2495 = vpow2.f32 %v1605_v20  ;;  %v1578_v6 = vsub.f32 %v4221_v62, %v1561_v54  ;;  %v1663_v20 = vmul.f32 1.442695, %v4235_v29  ;;  %v4236_v54 = vsub.f32 %v3381_v43, %v3392_v36 }
 0x384   : > { %v1261_v23 = vmul.f32 1.442695, %v4234_v58  ;;  %v1673_v58 = vmul.f32 1.442695, %v4251_v59 }
 0x385   : > { %v2488_v34 = vpop.eup %2487  ;;  %v1609_v40 = vmul.f32 1.442695, %v1578_v6  ;;  %v1271_v62 = vmul.f32 1.442695, %v4236_v54 }
 0x386   : > { %1629 = vadd.xlane.f32.xlu1 %v2488_v34  ;;  %1631 = vadd.xlane.f32.xlu0 %v2486_v53  ;;  %v2490_v11 = vpop.eup %2489  ;;  %v4238_v34 = vsub.f32 %v3383_v37, %v4237_v57 }
 0x387   : > { %2497 = vpow2.f32 %v1609_v40 }
 0x388   : > { %2499 = vpow2.f32 %v1257_v55  ;;  %v1265_v40 = vmul.f32 1.442695, %v4238_v34  ;;  %v4254_v34 = vsub.f32 %v3429_v18, %v3440_v26  ;;  %v4257_v26 = vld [vmem:[#allocation49_spill] sm:$0xff] }
 0x389   : > { %v2492_v44 = vpop.eup %2491  ;;  %2501 = vpow2.f32 %v1255_v27 }
 0x38a   : > { %1633 = vadd.xlane.f32.xlu1 %v2492_v44  ;;  %1635 = vadd.xlane.f32.xlu0 %v2490_v11  ;;  %v2494_v10 = vpop.eup %2493  ;;  %2503 = vpow2.f32 %v1263_v63  ;;  %v4239_v11 = vsub.f32 %v4232_v8, %v3487_v48  ;;  %v4241_v44 = vsub.f32 %v3349_v14, %v4240_v5  ;;  %v4244_v48 = vsub.f32 %v3399_v35, %v4243_v12  ;;  %v883_v8 = vld [vmem:[#allocation4] sm:$0xff] }
 0x38b   : > { %2505 = vpow2.f32 %v1661_v47  ;;  %v4245_v14 = vsub.f32 %v3383_v37, %v3511_v45  ;;  %v4249_v45 = vld [vmem:[#allocation40_spill] sm:$0xff] }
 0x38c   : > { %2507 = vpow2.f32 %v1659_v17  ;;  %v1665_v51 = vmul.f32 1.442695, %v4239_v11  ;;  %v1667_v36 = vmul.f32 1.442695, %v4241_v44  ;;  %v1269_v22 = vmul.f32 1.442695, %v4244_v48 }
 0x38d   : > { %v2496_v16 = vpop.eup %2495  ;;  %2509 = vpow2.f32 %v1259_v46  ;;  %v1669_v27 = vmul.f32 1.442695, %v4245_v14  ;;  %v1279_v17 = vmul.f32 1.442695, %v4248_v42  ;;  %v4250_v7 = vsub.f32 %v3415_v33, %v4249_v45  ;;  %v4255_v44 = vld [vmem:[#allocation41_spill] sm:$0xff] }
 0x38e   : > { %1637 = vadd.xlane.f32.xlu1 %v2496_v16  ;;  %1639 = vadd.xlane.f32.xlu0 %v2494_v10  ;;  %2511 = vpow2.f32 %v1267_v39  ;;  %v4242_v10 = vsub.f32 %v3397_v30, %v3408_v19  ;;  %v4246_v19 = vld [vmem:[#allocation47_spill] sm:$0xff]  ;;  %v4258_v48 = vsub.f32 %v3415_v33, %v4257_v26  ;;  %v887_v33 = vld [vmem:[#allocation4 + $0x20] sm:$0xff] }
 0x38f   : > { %2513 = vpow2.f32 %v1261_v23  ;;  %v4247_v63 = vsub.f32 %v3365_v4, %v4246_v19  ;;  %v1273_v39 = vmul.f32 1.442695, %v4250_v7  ;;  %v4252_v23 = vld [vmem:[#allocation48_spill] sm:$0xff]  ;;  %v4259_v19 = vld [vmem:[#allocation50_spill] sm:$0xff] }
 0x390   : > { %2515 = vpow2.f32 %v1663_v20  ;;  %v1275_v16 = vmul.f32 1.442695, %v4242_v10  ;;  %v4253_v29 = vsub.f32 %v3381_v43, %v4252_v23  ;;  %v886_v7 = vld [vmem:[#allocation4 + $0x18] sm:$0xff] }
 0x391   : > { %v2498_v56 = vpop.eup %2497  ;;  %2517 = vpow2.f32 %v1271_v62  ;;  %v1671_v3 = vmul.f32 1.442695, %v4247_v63  ;;  %v4260_v63 = vsub.f32 %v3397_v30, %v4259_v19  ;;  %v4264_v30 = vld [vmem:[#allocation51_spill] sm:$0xff] }
 0x392   : > { %1641 = vadd.xlane.f32.xlu1 %v2498_v56  ;;  %v2500_v55 = vpop.eup %2499  ;;  %2519 = vpow2.f32 %v1265_v40  ;;  %v1675_v20 = vmul.f32 1.442695, %v4253_v29  ;;  %v1283_v40 = vmul.f32 1.442695, %v4254_v34 }
 0x393   : > { %v2502_v61 = vpop.eup %2501  ;;  %2521 = vpow2.f32 %v1665_v51  ;;  %v1288_v54 = vmul.f32 %v2500_v55, %v884_v9  ;;  %v885_v51 = vld [vmem:[#allocation4 + $0x10] sm:$0xff] }
 0x394   : > { %v3737_v52 = vpop.eup %2503  ;;  %2523 = vpow2.f32 %v1667_v36  ;;  %v1287_v11 = vmul.f32 %v2502_v61, %v883_v8  ;;  %v4256_v36 = vsub.f32 %v3431_v13, %v4255_v44 }
 0x395   : > { %v2506_v47 = vpop.eup %2505  ;;  %2525 = vpow2.f32 %v1275_v16 }
 0x396   : > { %v2508_v37 = vpop.eup %2507  ;;  %2527 = vpow2.f32 %v1269_v22  ;;  %v1692_v62 = vmul.f32 %v2506_v47, %v884_v9  ;;  %v1277_v10 = vmul.f32 1.442695, %v4256_v36  ;;  %v1677_v22 = vmul.f32 1.442695, %v4258_v48  ;;  %v4262_v9 = vld [vmem:[#allocation43_spill] sm:$0xff] }
 0x397   : > { %v2510_v4 = vpop.eup %2509  ;;  %2529 = vpow2.f32 %v1669_v27  ;;  %v1691_v35 = vmul.f32 %v2508_v37, %v883_v8 }
 0x398   : > { %v3755_v31 = vpop.eup %2511  ;;  %2531 = vpow2.f32 %v1671_v3  ;;  %v1679_v3 = vmul.f32 1.442695, %v4260_v63  ;;  %v1289_v47 = vmul.f32 %v2510_v4, %v885_v51  ;;  %v4265_v4 = vsub.f32 %v3431_v13, %v4264_v30 }
 0x399   : > { %v2514_v57 = vpop.eup %2513  ;;  %2533 = vpow2.f32 %v1279_v17  ;;  %v4261_v17 = vld [vmem:[#allocation42_spill] sm:$0xff] }
 0x39a   : > { %v2516_v50 = vpop.eup %2515  ;;  %2535 = vpow2.f32 %v1273_v39  ;;  %v4263_v37 = vsub.f32 %v4261_v17, %v4262_v9  ;;  %v1681_v59 = vmul.f32 1.442695, %v4265_v4 }
 0x39b   : > { %v3767_v12 = vpop.eup %2517  ;;  %2537 = vpow2.f32 %v1673_v58  ;;  %v1693_v39 = vmul.f32 %v2516_v50, %v885_v51  ;;  %v1290_v51 = vmul.f32 %v2514_v57, %v886_v7 }
 0x39c   : > { %v2520_v27 = vpop.eup %2519  ;;  %2539 = vpow2.f32 %v1675_v20  ;;  %v1281_v45 = vmul.f32 1.442695, %v4263_v37 }
 0x39d   : > { %v2522_v42 = vpop.eup %2521  ;;  %2541 = vpow2.f32 %v1283_v40 }
 0x39e   : > { %v2524_v8 = vpop.eup %2523  ;;  %2543 = vpow2.f32 %v1277_v10  ;;  %v1694_v44 = vmul.f32 %v2522_v42, %v886_v7  ;;  %v890_v42 = vld [vmem:[#allocation4 + $0x38] sm:$0xff]  ;;  %v4273_v7 = vld [vmem:[#allocation45_spill] sm:$0xff] }
 0x39f   : > { %v3786_v23 = vpop.eup %2525  ;;  %2545 = vpow2.f32 %v1677_v22  ;;  %v1695_v36 = vmul.f32 %v2524_v8, %v887_v33 }
 0x3a0   : > { %2547 = vpow2.f32 %v1679_v3 }
 0x3a1   : > { %2549 = vpow2.f32 %v1281_v45 }
 0x3a2   : > { %2551 = vpow2.f32 %v1681_v59 }
 0x3da   : > { %v3661_v60 = vpop.xlane.xlu0 %1207 }
 0x3db   : > { %v3665_v32 = vpop.xlane.xlu1 %1209  ;;  %v1303_v61 = vadd.f32 %v1287_v11, %v3661_v60  ;;  %v1291_v11 = vmul.f32 %v3737_v52, %v887_v33  ;;  %v4272_v33 = vld [vmem:[#allocation44_spill] sm:$0xff] }
 0x3dc   : > { %v1304_v43 = vadd.f32 %v1288_v54, %v3665_v32  ;;  %v2528_v54 = vpop.eup %2527 }
 0x3dd   : > { %v2530_v13 = vpop.eup %2529 }
 0x3de   : > { %v3663_v1 = vpop.xlane.xlu0 %1211  ;;  %v2532_v10 = vpop.eup %2531 }
 0x3df   : > { %v3669_v15 = vpop.xlane.xlu1 %1215  ;;  %v1305_v29 = vadd.f32 %v1289_v47, %v3663_v1  ;;  %v4268_v1 = vld [vmem:[#allocation53_spill] sm:$0xff]  ;;  %v3798_v52 = vpop.eup %2533 }
 0x3e0   : > { %v1307_v57 = vadd.f32 %v1291_v11, %v3669_v15 }
 0x3e2   : > { %v3667_v49 = vpop.xlane.xlu0 %1213 }
 0x3e3   : > { %v1306_v26 = vadd.f32 %v1290_v51, %v3667_v49  ;;  %v892_v51 = vld [vmem:[#allocation4 + $0x48] sm:$0xff] }
 0x3e6   : > { %v3671_v28 = vpop.xlane.xlu0 %1217 }
 0x3ea   : > { %v3679_v38 = vpop.xlane.xlu1 %1221  ;;  %v3681_v24 = vpop.xlane.xlu0 %1219 }
 0x3ee   : > { %v3695_v21 = vpop.xlane.xlu1 %1225  ;;  %v3697_v2 = vpop.xlane.xlu0 %1223 }
 0x3f2   : > { %v3711_v6 = vpop.xlane.xlu1 %1229  ;;  %v3713_v53 = vpop.xlane.xlu0 %1227 }
 0x3f6   : > { %v3727_v56 = vpop.xlane.xlu1 %1233  ;;  %v3729_v41 = vpop.xlane.xlu0 %1231 }
 0x3fa   : > { %v3745_v0 = vpop.xlane.xlu1 %1237  ;;  %v3747_v46 = vpop.xlane.xlu0 %1235 }
 0x3fe   : > { %v1614_v5 = vpop.xlane.xlu1 %1613 }
 0x3ff   : > { %v1708_v16 = vadd.f32 %v1692_v62, %v1614_v5  ;;  %v1612_v55 = vpop.xlane.xlu0 %1611  ;;  %v4266_v62 = vld [vmem:[#allocation52_spill] sm:$0xff]  ;;  %v888_v5 = vld [vmem:[#allocation4 + $0x28] sm:$0xff] }
 0x400   : > { %v1707_v14 = vadd.f32 %v1691_v35, %v1612_v55  ;;  %v4267_v34 = vsub.f32 %v3413_v25, %v4266_v62  ;;  %v889_v35 = vld [vmem:[#allocation4 + $0x30] sm:$0xff]  ;;  %v1292_v3 = vmul.f32 %v2520_v27, %v888_v5  ;;  %v1696_v37 = vmul.f32 %v2530_v13, %v888_v5 }
 0x401   : > { %v1758_v32 = vsel %vm1723_vm4, %v1304_v43, %v1708_v16  ;;  %v4269_v43 = vsub.f32 %v4261_v17, %v4268_v1  ;;  %v1293_v47 = vmul.f32 %v3755_v31, %v889_v35  ;;  %v891_v17 = vld [vmem:[#allocation4 + $0x40] sm:$0xff]  ;;  %v1697_v49 = vmul.f32 %v2532_v10, %v889_v35  ;;  %v893_v13 = vld [vmem:[#allocation4 + $0x50] sm:$0xff] }
 0x402   : > { %1774 = vst.msk [vmem:[#allocation4 + $0x8] sm:$0xff] %vm1740_vm5, %v1758_v32  ;;  %v1757_v60 = vsel %vm1723_vm4, %v1303_v61, %v1707_v14  ;;  %v1683_v40 = vmul.f32 1.442695, %v4267_v34  ;;  %v2536_v61 = vpop.eup %2535  ;;  %v4270_v14 = vld [vmem:[#allocation54_spill] sm:$0xff]  ;;  %v1308_v8 = vadd.f32 %v1292_v3, %v3671_v28  ;;  %v1294_v34 = vmul.f32 %v2528_v54, %v890_v42 }
 0x403   : > { %1773 = vst.msk [vmem:[#allocation4] sm:$0xff] %vm1740_vm5, %v1757_v60  ;;  %v1616_v58 = vpop.xlane.xlu0 %1615  ;;  %v1685_v16 = vmul.f32 1.442695, %v4269_v43  ;;  %v4271_v19 = vsub.f32 %v3429_v18, %v4270_v14  ;;  %v2538_v32 = vpop.eup %2537  ;;  %v4274_v60 = vsub.f32 %v4272_v33, %v4273_v7  ;;  %v1309_v30 = vadd.f32 %v1293_v47, %v3681_v24 }
 0x404   : > { %v1709_v20 = vadd.f32 %v1693_v39, %v1616_v58  ;;  %2553 = vpow2.f32 %v1683_v40  ;;  %v2540_v45 = vpop.eup %2539  ;;  %v1295_v40 = vmul.f32 %v3767_v12, %v891_v17  ;;  %v1698_v35 = vmul.f32 %v2538_v32, %v890_v42 }
 0x405   : > { %v1687_v63 = vmul.f32 1.442695, %v4271_v19  ;;  %v1285_v39 = vmul.f32 1.442695, %v4274_v60  ;;  %2555 = vpow2.f32 %v1685_v16  ;;  %v3813_v27 = vpop.eup %2541  ;;  %v1699_v24 = vmul.f32 %v2540_v45, %v891_v17 }
 0x406   : > { %v1759_v50 = vsel %vm1723_vm4, %v1305_v29, %v1709_v20  ;;  %v2544_v58 = vpop.eup %2543  ;;  %v4275_v29 = vld [vmem:[#allocation55_spill] sm:$0xff]  ;;  %v1310_v12 = vadd.f32 %v1294_v34, %v3679_v38  ;;  %v1311_v10 = vadd.f32 %v1295_v40, %v3697_v2 }
 0x407   : > { %1775 = vst.msk [vmem:[#allocation4 + $0x10] sm:$0xff] %vm1740_vm5, %v1759_v50  ;;  %v1618_v25 = vpop.xlane.xlu1 %1617  ;;  %v1620_v55 = vpop.xlane.xlu0 %1619  ;;  %2557 = vpow2.f32 %v1687_v63  ;;  %v4276_v20 = vsub.f32 %v4272_v33, %v4275_v29 }
 0x408   : > { %v1710_v48 = vadd.f32 %v1694_v44, %v1618_v25  ;;  %v1711_v22 = vadd.f32 %v1695_v36, %v1620_v55  ;;  %v2546_v11 = vpop.eup %2545  ;;  %2559 = vpow2.f32 %v1285_v39  ;;  %v1296_v25 = vmul.f32 %v2536_v61, %v892_v51 }
 0x409   : > { %v1689_v62 = vmul.f32 1.442695, %v4276_v20  ;;  %v2548_v50 = vpop.eup %2547  ;;  %v1297_v55 = vmul.f32 %v3786_v23, %v893_v13  ;;  %v1700_v14 = vmul.f32 %v2546_v11, %v892_v51 }
 0x40a   : > { %v1760_v9 = vsel %vm1723_vm4, %v1306_v26, %v1710_v48  ;;  %v1761_v15 = vsel %vm1723_vm4, %v1307_v57, %v1711_v22  ;;  %v2550_v54 = vpop.eup %2549  ;;  %v894_v57 = vld [vmem:[#allocation4 + $0x58] sm:$0xff]  ;;  %v895_v26 = vld [vmem:[#allocation4 + $0x60] sm:$0xff]  ;;  %v1701_v19 = vmul.f32 %v2548_v50, %v893_v13  ;;  %v1312_v3 = vadd.f32 %v1296_v25, %v3695_v21  ;;  %v4287_v25 = vld [vmem:[#allocation22_spill] sm:$0xff] (!%p2242_p1) }
 0x40b   : > { %1776 = vst.msk [vmem:[#allocation4 + $0x18] sm:$0xff] %vm1740_vm5, %v1760_v9  ;;  %1777 = vst.msk [vmem:[#allocation4 + $0x20] sm:$0xff] %vm1740_vm5, %v1761_v15  ;;  %v1622_v18 = vpop.xlane.xlu1 %1621  ;;  %v1624_v31 = vpop.xlane.xlu0 %1623  ;;  %2561 = vpow2.f32 %v1689_v62  ;;  %v1313_v61 = vadd.f32 %v1297_v55, %v3713_v53  ;;  %v1298_v42 = vmul.f32 %v2544_v58, %v894_v57  ;;  %v1299_v17 = vmul.f32 %v3798_v52, %v895_v26  ;;  %v896_v9 = vld [vmem:[#allocation4 + $0x68] sm:$0xff]  ;;  %v897_v15 = vld [vmem:[#allocation4 + $0x70] sm:$0xff] }
 0x40c   : > { %v1712_v4 = vadd.f32 %v1696_v37, %v1622_v18  ;;  %v1713_v59 = vadd.f32 %v1697_v49, %v1624_v31  ;;  %v2552_v16 = vpop.eup %2551  ;;  %v898_v62 = vld [vmem:[#allocation4 + $0x78] sm:$0xff]  ;;  %1915 = vst.msk [vmem:[%s2869_s10 + $0x50] sm:$0xff] (!%p2242_p1), %vm1740_vm5, %v4287_v25  ;;  %v4288_v55 = vld [vmem:[#allocation17_spill] sm:$0xff] (!%p2242_p1) }
 0x40d   : > { %v1702_v45 = vmul.f32 %v2552_v16, %v894_v57  ;;  %v1314_v60 = vadd.f32 %v1298_v42, %v3711_v6  ;;  %v1315_v39 = vadd.f32 %v1299_v17, %v3729_v41  ;;  %v4286_v16 = vld [vmem:[#allocation15_spill] sm:$0xff] (!%p2242_p1)  ;;  %1916 = vst.msk [vmem:[%s2869_s10 + $0x58] sm:$0xff] (!%p2242_p1), %vm1740_vm5, %v4288_v55 }
 0x40e   : > { %v1762_v5 = vsel %vm1723_vm4, %v1308_v8, %v1712_v4  ;;  %v1763_v28 = vsel %vm1723_vm4, %v1309_v30, %v1713_v59  ;;  %v2554_v63 = vpop.eup %2553  ;;  %v1300_v8 = vmul.f32 %v2550_v54, %v896_v9  ;;  %v1301_v30 = vmul.f32 %v3813_v27, %v897_v15  ;;  %v4281_v54 = vld [vmem:[#allocation18_spill] sm:$0xff] (!%p2242_p1)  ;;  %1914 = vst.msk [vmem:[%s2869_s10 + $0x48] sm:$0xff] (!%p2242_p1), %vm1740_vm5, %v4286_v16  ;;  %v4289_v57 = vld [vmem:[#allocation23_spill] sm:$0xff] (!%p2242_p1) }
 0x40f   : > { %1778 = vst.msk [vmem:[#allocation4 + $0x28] sm:$0xff] %vm1740_vm5, %v1762_v5  ;;  %1779 = vst.msk [vmem:[#allocation4 + $0x30] sm:$0xff] %vm1740_vm5, %v1763_v28  ;;  %v1626_v44 = vpop.xlane.xlu1 %1625  ;;  %v1628_v36 = vpop.xlane.xlu0 %1627  ;;  %v1703_v33 = vmul.f32 %v2554_v63, %v895_v26  ;;  %v4290_v26 = vld [vmem:[#allocation19_spill] sm:$0xff] (!%p2242_p1) }
 0x410   : > { %v1714_v1 = vadd.f32 %v1698_v35, %v1626_v44  ;;  %v1715_v43 = vadd.f32 %v1699_v24, %v1628_v36  ;;  %v2556_v32 = vpop.eup %2555  ;;  %v1316_v34 = vadd.f32 %v1300_v8, %v3727_v56  ;;  %v1317_v40 = vadd.f32 %v1301_v30, %v3747_v46  ;;  %v4277_v46 = vld [vmem:[#allocation14_spill] sm:$0xff] (!%p2242_p1)  ;;  %v4279_v44 = vld [vmem:[#allocation9_spill] sm:$0xff] (!%p2242_p1)  ;;  %1909 = vst.msk [vmem:[%s2869_s10 + $0x20] sm:$0xff] (!%p2242_p1), %vm1740_vm5, %v4281_v54  ;;  %v1795_v63 = vld [vmem:[#allocation3 + $0x10] sm:$0xff] (!%p2242_p1) }
 0x411   : > { %v2558_v7 = vpop.eup %2557  ;;  %v1704_v58 = vmul.f32 %v2556_v32, %v896_v9  ;;  %1905 = vst.msk [vmem:[%s2869_s10] sm:$0xff] (!%p2242_p1), %vm1740_vm5, %v4277_v46  ;;  %1907 = vst.msk [vmem:[%s2869_s10 + $0x10] sm:$0xff] (!%p2242_p1), %vm1740_vm5, %v4279_v44  ;;  %v4280_v36 = vld [vmem:[#allocation10_spill] sm:$0xff] (!%p2242_p1)  ;;  %v1799_v9 = vld [vmem:[#allocation3 + $0x30] sm:$0xff] (!%p2242_p1) }
 0x412   : > { %v1764_v48 = vsel %vm1723_vm4, %v1310_v12, %v1714_v1  ;;  %v1765_v22 = vsel %vm1723_vm4, %v1311_v10, %v1715_v43  ;;  %v2560_v31 = vpop.eup %2559  ;;  %v1705_v29 = vmul.f32 %v2558_v7, %v897_v15  ;;  %1908 = vst.msk [vmem:[%s2869_s10 + $0x18] sm:$0xff] (!%p2242_p1), %vm1740_vm5, %v4280_v36  ;;  %v4282_v12 = vld [vmem:[#allocation12_spill] sm:$0xff] (!%p2242_p1)  ;;  %v4284_v1 = vld [vmem:[#allocation13_spill] sm:$0xff] (!%p2242_p1)  ;;  %v4285_v43 = vld [vmem:[#allocation11_spill] sm:$0xff] (!%p2242_p1) }
 0x413   : > { %1780 = vst.msk [vmem:[#allocation4 + $0x38] sm:$0xff] %vm1740_vm5, %v1764_v48  ;;  %1781 = vst.msk [vmem:[#allocation4 + $0x40] sm:$0xff] %vm1740_vm5, %v1765_v22  ;;  %v1630_v38 = vpop.xlane.xlu1 %1629  ;;  %v1632_v2 = vpop.xlane.xlu0 %1631  ;;  %v1302_v51 = vmul.f32 %v2560_v31, %v898_v62  ;;  %v4283_v10 = vld [vmem:[#allocation20_spill] sm:$0xff] (!%p2242_p1)  ;;  %v4292_v22 = vld [vmem:[#allocation21_spill] sm:$0xff] (!%p2242_p1) }
 0x414   : > { %v1716_v23 = vadd.f32 %v1700_v14, %v1630_v38  ;;  %v1717_v47 = vadd.f32 %v1701_v19, %v1632_v2  ;;  %1910 = vst.msk [vmem:[%s2869_s10 + $0x28] sm:$0xff] (!%p2242_p1), %vm1740_vm5, %v4282_v12  ;;  %1911 = vst.msk [vmem:[%s2869_s10 + $0x30] sm:$0xff] (!%p2242_p1), %vm1740_vm5, %v4283_v10  ;;  %v4291_v48 = vld [vmem:[#allocation24_spill] sm:$0xff] (!%p2242_p1)  ;;  %v1793_v14 = vld [vmem:[#allocation3] sm:$0xff] (!%p2242_p1) }
 0x415   : > { %v2562_v20 = vpop.eup %2561  ;;  %v1318_v24 = vadd.f32 %v1302_v51, %v3745_v0  ;;  %v4278_v0 = vld [vmem:[#allocation16_spill] sm:$0xff] (!%p2242_p1)  ;;  %1912 = vst.msk [vmem:[%s2869_s10 + $0x38] sm:$0xff] (!%p2242_p1), %vm1740_vm5, %v4284_v1  ;;  %1913 = vst.msk [vmem:[%s2869_s10 + $0x40] sm:$0xff] (!%p2242_p1), %vm1740_vm5, %v4285_v43  ;;  %v1794_v19 = vld [vmem:[#allocation3 + $0x8] sm:$0xff] (!%p2242_p1)  ;;  %v1825_v38 = vmax.f32 (!%p2242_p1), %v1793_v14, 0.0 }
 0x416   : > { %v1766_v37 = vsel %vm1723_vm4, %v1312_v3, %v1716_v23  ;;  %v1767_v49 = vsel %vm1723_vm4, %v1313_v61, %v1717_v47  ;;  %v1706_v28 = vmul.f32 %v2562_v20, %v898_v62  ;;  %1906 = vst.msk [vmem:[%s2869_s10 + $0x8] sm:$0xff] (!%p2242_p1), %vm1740_vm5, %v4278_v0  ;;  %1917 = vst.msk [vmem:[%s2869_s10 + $0x60] sm:$0xff] (!%p2242_p1), %vm1740_vm5, %v4289_v57  ;;  %v1826_v2 = vmax.f32 (!%p2242_p1), %v1794_v19, 0.0  ;;  %v1796_v61 = vld [vmem:[#allocation3 + $0x18] sm:$0xff] (!%p2242_p1)  ;;  %v1797_v23 = vld [vmem:[#allocation3 + $0x20] sm:$0xff] (!%p2242_p1) }
 0x417   : > { %1782 = vst.msk [vmem:[#allocation4 + $0x48] sm:$0xff] %vm1740_vm5, %v1766_v37  ;;  %1783 = vst.msk [vmem:[#allocation4 + $0x50] sm:$0xff] %vm1740_vm5, %v1767_v49  ;;  %v1634_v21 = vpop.xlane.xlu1 %1633  ;;  %v1636_v53 = vpop.xlane.xlu0 %1635  ;;  %v1827_v3 = vmax.f32 (!%p2242_p1), %v1795_v63, 0.0  ;;  %v1798_v47 = vld [vmem:[#allocation3 + $0x28] sm:$0xff] (!%p2242_p1)  ;;  %v1828_v32 = vmax.f32 (!%p2242_p1), %v1796_v61, 0.0  ;;  %v1829_v42 = vmax.f32 (!%p2242_p1), %v1797_v23, 0.0  ;;  %v1841_v37 = vsub.f32 (!%p2242_p1), %v1793_v14, %v1825_v38 }
 0x418   : > { %v1718_v52 = vadd.f32 %v1702_v45, %v1634_v21  ;;  %v1719_v18 = vadd.f32 %v1703_v33, %v1636_v53  ;;  %1918 = vst.msk [vmem:[%s2869_s10 + $0x68] sm:$0xff] (!%p2242_p1), %vm1740_vm5, %v4290_v26  ;;  %1919 = vst.msk [vmem:[%s2869_s10 + $0x70] sm:$0xff] (!%p2242_p1), %vm1740_vm5, %v4291_v48  ;;  %v1830_v17 = vmax.f32 (!%p2242_p1), %v1798_v47, 0.0  ;;  %v1800_v15 = vld [vmem:[#allocation3 + $0x38] sm:$0xff] (!%p2242_p1)  ;;  %v1842_v49 = vsub.f32 (!%p2242_p1), %v1794_v19, %v1826_v2  ;;  %v1801_v7 = vld [vmem:[#allocation3 + $0x40] sm:$0xff] (!%p2242_p1) }
 0x419   : > { %1920 = vst.msk [vmem:[%s2869_s10 + $0x78] sm:$0xff] (!%p2242_p1), %vm1740_vm5, %v4292_v22  ;;  %1921 = vst.msk [vmem:[%s2874_s24] sm:$0xff] (!%p2242_p1), %vm1740_vm5, %v1825_v38  ;;  %v1843_v45 = vsub.f32 (!%p2242_p1), %v1795_v63, %v1827_v3  ;;  %v1831_v33 = vmax.f32 (!%p2242_p1), %v1799_v9, 0.0  ;;  %v1802_v21 = vld [vmem:[#allocation3 + $0x48] sm:$0xff] (!%p2242_p1)  ;;  %v1844_v53 = vsub.f32 (!%p2242_p1), %v1796_v61, %v1828_v32  ;;  %v1804_v31 = vld [vmem:[#allocation3 + $0x58] sm:$0xff] (!%p2242_p1) }
 0x41a   : > { %v1768_v4 = vsel %vm1723_vm4, %v1314_v60, %v1718_v52  ;;  %v1769_v59 = vsel %vm1723_vm4, %v1315_v39, %v1719_v18  ;;  %1922 = vst.msk [vmem:[%s2874_s24 + $0x8] sm:$0xff] (!%p2242_p1), %vm1740_vm5, %v1826_v2  ;;  %1923 = vst.msk [vmem:[%s2874_s24 + $0x10] sm:$0xff] (!%p2242_p1), %vm1740_vm5, %v1827_v3  ;;  %v1845_v60 = vsub.f32 (!%p2242_p1), %v1797_v23, %v1829_v42  ;;  %v1832_v52 = vmax.f32 (!%p2242_p1), %v1800_v15, 0.0  ;;  %v1803_v18 = vld [vmem:[#allocation3 + $0x50] sm:$0xff] (!%p2242_p1)  ;;  %v1805_v8 = vld [vmem:[#allocation3 + $0x60] sm:$0xff] (!%p2242_p1) }
 0x41b   : > { %1784 = vst.msk [vmem:[#allocation4 + $0x58] sm:$0xff] %vm1740_vm5, %v1768_v4  ;;  %1785 = vst.msk [vmem:[#allocation4 + $0x60] sm:$0xff] %vm1740_vm5, %v1769_v59  ;;  %v1638_v6 = vpop.xlane.xlu1 %1637  ;;  %v1640_v41 = vpop.xlane.xlu0 %1639  ;;  %v1846_v39 = vsub.f32 (!%p2242_p1), %v1798_v47, %v1830_v17  ;;  %v1857_v30 = vmul.f32 (!%p2242_p1), 1.442695, %v1841_v37  ;;  %v1859_v4 = vmul.f32 (!%p2242_p1), 1.442695, %v1842_v49 }
 0x41c   : > { %v1720_v11 = vadd.f32 %v1704_v58, %v1638_v6  ;;  %v1721_v27 = vadd.f32 %v1705_v29, %v1640_v41  ;;  %1924 = vst.msk [vmem:[%s2874_s24 + $0x18] sm:$0xff] (!%p2242_p1), %vm1740_vm5, %v1828_v32  ;;  %1925 = vst.msk [vmem:[%s2874_s24 + $0x20] sm:$0xff] (!%p2242_p1), %vm1740_vm5, %v1829_v42  ;;  %v1861_v59 = vmul.f32 (!%p2242_p1), 1.442695, %v1843_v45  ;;  %v1847_v58 = vsub.f32 (!%p2242_p1), %v1799_v9, %v1831_v33  ;;  %v1807_v46 = vld [vmem:[#allocation3 + $0x70] sm:$0xff] (!%p2242_p1)  ;;  %v1808_v0 = vld [vmem:[#allocation3 + $0x78] sm:$0xff] (!%p2242_p1) }
 0x41d   : > { %1792 = sbr.rel (%p2242_p1) target bundleno = 1098 (0x44a), region = 127  ;;  %1926 = vst.msk [vmem:[%s2874_s24 + $0x28] sm:$0xff] (!%p2242_p1), %vm1740_vm5, %v1830_v17  ;;  %1927 = vst.msk [vmem:[%s2874_s24 + $0x30] sm:$0xff] (!%p2242_p1), %vm1740_vm5, %v1831_v33  ;;  %v1863_v29 = vmul.f32 (!%p2242_p1), 1.442695, %v1844_v53  ;;  %v1848_v6 = vsub.f32 (!%p2242_p1), %v1800_v15, %v1832_v52  ;;  %2563 = vpow2.f32 (!%p2242_p1), %v1857_v30  ;;  %v1835_v51 = vmax.f32 (!%p2242_p1), %v1803_v18, 0.0 }
 0x41e   : > { %v1770_v13 = vsel %vm1723_vm4, %v1316_v34, %v1720_v11  ;;  %v1771_v5 = vsel %vm1723_vm4, %v1317_v40, %v1721_v27  ;;  %v1865_v20 = vmul.f32 (!%p2242_p1), 1.442695, %v1845_v60  ;;  %v1867_v62 = vmul.f32 (!%p2242_p1), 1.442695, %v1846_v39  ;;  %1928 = vst.msk [vmem:[%s2874_s24 + $0x38] sm:$0xff] (!%p2242_p1), %vm1740_vm5, %v1832_v52  ;;  %v1806_v11 = vld [vmem:[#allocation3 + $0x68] sm:$0xff] (!%p2242_p1) }
 0x41f   : > { %1786 = vst.msk [vmem:[#allocation4 + $0x68] sm:$0xff] %vm1740_vm5, %v1770_v13  ;;  %1787 = vst.msk [vmem:[#allocation4 + $0x70] sm:$0xff] %vm1740_vm5, %v1771_v5  ;;  %v1642_v35 = vpop.xlane.xlu1 %1641  ;;  %v1869_v41 = vmul.f32 (!%p2242_p1), 1.442695, %v1847_v58  ;;  %v1833_v34 = vmax.f32 (!%p2242_p1), %v1801_v7, 0.0  ;;  %v1834_v40 = vmax.f32 (!%p2242_p1), %v1802_v21, 0.0  ;;  %2565 = vpow2.f32 (!%p2242_p1), %v1859_v4 }
 0x420   : > { %v1722_v50 = vadd.f32 %v1706_v28, %v1642_v35  ;;  %v1871_v27 = vmul.f32 (!%p2242_p1), 1.442695, %v1848_v6  ;;  %v1836_v13 = vmax.f32 (!%p2242_p1), %v1804_v31, 0.0  ;;  %2567 = vpow2.f32 (!%p2242_p1), %v1861_v59  ;;  %1931 = vst.msk [vmem:[%s2874_s24 + $0x50] sm:$0xff] (!%p2242_p1), %vm1740_vm5, %v1835_v51  ;;  %v1809_v26 = vld [vmem:[#allocation4] sm:$0xff] (!%p2242_p1)  ;;  %v1810_v22 = vld [vmem:[#allocation4 + $0x8] sm:$0xff] (!%p2242_p1) }
 0x421   : > { %v1849_v5 = vsub.f32 (!%p2242_p1), %v1801_v7, %v1833_v34  ;;  %1929 = vst.msk [vmem:[%s2874_s24 + $0x40] sm:$0xff] (!%p2242_p1), %vm1740_vm5, %v1833_v34  ;;  %v1850_v28 = vsub.f32 (!%p2242_p1), %v1802_v21, %v1834_v40  ;;  %1930 = vst.msk [vmem:[%s2874_s24 + $0x48] sm:$0xff] (!%p2242_p1), %vm1740_vm5, %v1834_v40  ;;  %v1837_v35 = vmax.f32 (!%p2242_p1), %v1805_v8, 0.0  ;;  %2569 = vpow2.f32 (!%p2242_p1), %v1863_v29  ;;  %v1811_v63 = vld [vmem:[#allocation4 + $0x10] sm:$0xff] (!%p2242_p1)  ;;  %v1812_v61 = vld [vmem:[#allocation4 + $0x18] sm:$0xff] (!%p2242_p1) }
 0x422   : > { %v1772_v56 = vsel %vm1723_vm4, %v1318_v24, %v1722_v50  ;;  %v1851_v24 = vsub.f32 (!%p2242_p1), %v1803_v18, %v1835_v51  ;;  %v1852_v50 = vsub.f32 (!%p2242_p1), %v1804_v31, %v1836_v13  ;;  %1932 = vst.msk [vmem:[%s2874_s24 + $0x58] sm:$0xff] (!%p2242_p1), %vm1740_vm5, %v1836_v13  ;;  %2571 = vpow2.f32 (!%p2242_p1), %v1865_v20  ;;  %v1813_v32 = vld [vmem:[#allocation4 + $0x20] sm:$0xff] (!%p2242_p1)  ;;  %v1814_v15 = vld [vmem:[#allocation4 + $0x28] sm:$0xff] (!%p2242_p1)  ;;  %v1815_v33 = vld [vmem:[#allocation4 + $0x30] sm:$0xff] (!%p2242_p1) }
 0x423   : > { %1788 = vst.msk [vmem:[#allocation4 + $0x78] sm:$0xff] %vm1740_vm5, %v1772_v56  ;;  %v1838_v56 = vmax.f32 (!%p2242_p1), %v1806_v11, 0.0  ;;  %v1873_v44 = vmul.f32 (!%p2242_p1), 1.442695, %v1849_v5  ;;  %v1853_v36 = vsub.f32 (!%p2242_p1), %v1805_v8, %v1837_v35  ;;  %1933 = vst.msk [vmem:[%s2874_s24 + $0x60] sm:$0xff] (!%p2242_p1), %vm1740_vm5, %v1837_v35  ;;  %2573 = vpow2.f32 (!%p2242_p1), %v1867_v62  ;;  %v1816_v60 = vld [vmem:[#allocation4 + $0x38] sm:$0xff] (!%p2242_p1) }
 0x424   : > { %v1875_v54 = vmul.f32 1.442695, %v1850_v28  ;;  %2575 = vpow2.f32 %v1869_v41  ;;  %v1877_v10 = vmul.f32 1.442695, %v1851_v24  ;;  %v1839_v1 = vmax.f32 %v1807_v46, 0.0  ;;  %v1817_v31 = vld [vmem:[#allocation4 + $0x40] sm:$0xff] }
 0x425   : > { %v1854_v12 = vsub.f32 %v1806_v11, %v1838_v56  ;;  %1934 = vst.msk [vmem:[%s2874_s24 + $0x68] sm:$0xff] %vm1740_vm5, %v1838_v56  ;;  %v1840_v43 = vmax.f32 %v1808_v0, 0.0  ;;  %2577 = vpow2.f32 %v1871_v27  ;;  %v1879_v16 = vmul.f32 1.442695, %v1852_v50  ;;  %v1818_v59 = vld [vmem:[#allocation4 + $0x48] sm:$0xff]  ;;  %v1819_v62 = vld [vmem:[#allocation4 + $0x50] sm:$0xff] }
 0x426   : > { %2579 = vpow2.f32 %v1873_v44  ;;  %v1881_v25 = vmul.f32 1.442695, %v1853_v36  ;;  %v1855_v55 = vsub.f32 %v1807_v46, %v1839_v1  ;;  %1935 = vst.msk [vmem:[%s2874_s24 + $0x70] sm:$0xff] %vm1740_vm5, %v1839_v1  ;;  %v1820_v40 = vld [vmem:[#allocation4 + $0x58] sm:$0xff]  ;;  %v1821_v13 = vld [vmem:[#allocation4 + $0x60] sm:$0xff]  ;;  %v1822_v24 = vld [vmem:[#allocation4 + $0x68] sm:$0xff] }
 0x427   : > { %v1856_v57 = vsub.f32 %v1808_v0, %v1840_v43  ;;  %1936 = vst.msk [vmem:[%s2874_s24 + $0x78] sm:$0xff] %vm1740_vm5, %v1840_v43  ;;  %2581 = vpow2.f32 %v1875_v54  ;;  %v1883_v48 = vmul.f32 1.442695, %v1854_v12  ;;  %v2564_v14 = vpop.eup %2563  ;;  %v1823_v0 = vld [vmem:[#allocation4 + $0x70] sm:$0xff] }
 0x428   : > { %2583 = vpow2.f32 %v1877_v10  ;;  %v1885_v19 = vmul.f32 1.442695, %v1855_v55  ;;  %v3936_v3 = vmul.f32 %v2564_v14, %v1809_v26 }
 0x429   : > { %v2566_v38 = vpop.eup %2565  ;;  %2585 = vpow2.f32 %v1879_v16  ;;  %v1887_v2 = vmul.f32 1.442695, %v1856_v57 }
 0x42a   : > { %v2568_v23 = vpop.eup %2567  ;;  %2587 = vpow2.f32 %v1881_v25  ;;  %v3938_v47 = vmul.f32 %v2566_v38, %v1810_v22  ;;  %v1953_v17 = vmax.f32 %v3936_v3, 1e-30  ;;  %v1824_v12 = vld [vmem:[#allocation4 + $0x78] sm:$0xff]  ;;  %vm1937_vm6 = vcmp.gt.f32.partialorder %v3936_v3, 0.0 }
 0x42b   : > { %v2570_v42 = vpop.eup %2569  ;;  %2589 = vpow2.f32 %v1883_v48  ;;  %v3941_v9 = vmul.f32 %v2568_v23, %v1811_v63 }
 0x42c   : > { %v2572_v37 = vpop.eup %2571  ;;  %2591 = vpow2.f32 %v1885_v19  ;;  %v1954_v49 = vmax.f32 %v3938_v47, 1e-30  ;;  %v3944_v45 = vmul.f32 %v2570_v42, %v1812_v61  ;;  %vm1938_vm7 = vcmp.gt.f32.partialorder %v3938_v47, 0.0 }
 0x42d   : > { %v2574_v7 = vpop.eup %2573  ;;  %2593 = vpow2.f32 %v1887_v2  ;;  %v1955_v21 = vmax.f32 %v3941_v9, 1e-30  ;;  %v3947_v53 = vmul.f32 %v2572_v37, %v1813_v32  ;;  %vm1939_vm8 = vcmp.gt.f32.partialorder %v3941_v9, 0.0 }
 0x42e   : > { %v2576_v39 = vpop.eup %2575  ;;  %2595 = vrcp.f32 %v1953_v17  ;;  %v1956_v52 = vmax.f32 %v3944_v45, 1e-30  ;;  %v3950_v18 = vmul.f32 %v2574_v7, %v1814_v15  ;;  %vm1940_vm9 = vcmp.gt.f32.partialorder %v3944_v45, 0.0 }
 0x42f   : > { %v2578_v8 = vpop.eup %2577  ;;  %2597 = vrcp.f32 %v1954_v49  ;;  %v1957_v30 = vmax.f32 %v3947_v53, 1e-30  ;;  %v3953_v4 = vmul.f32 %v2576_v39, %v1815_v33  ;;  %vm1941_vm10 = vcmp.gt.f32.partialorder %v3947_v53, 0.0 }
 0x430   : > { %v2580_v58 = vpop.eup %2579  ;;  %2599 = vrcp.f32 %v1955_v21  ;;  %v1958_v29 = vmax.f32 %v3950_v18, 1e-30  ;;  %v3956_v20 = vmul.f32 %v2578_v8, %v1816_v60  ;;  %vm1942_vm11 = vcmp.gt.f32.partialorder %v3950_v18, 0.0 }
 0x431   : > { %v2582_v6 = vpop.eup %2581  ;;  %2601 = vrcp.f32 %v1956_v52  ;;  %v1959_v41 = vmax.f32 %v3953_v4, 1e-30  ;;  %v3959_v34 = vmul.f32 %v2580_v58, %v1817_v31  ;;  %vm1943_vm12 = vcmp.gt.f32.partialorder %v3953_v4, 0.0 }
 0x432   : > { %v2584_v11 = vpop.eup %2583  ;;  %2603 = vrcp.f32 %v1957_v30  ;;  %v1960_v27 = vmax.f32 %v3956_v20, 1e-30  ;;  %v3962_v51 = vmul.f32 %v2582_v6, %v1818_v59  ;;  %vm1944_vm13 = vcmp.gt.f32.partialorder %v3956_v20, 0.0 }
 0x433   : > { %v2586_v5 = vpop.eup %2585  ;;  %2605 = vrcp.f32 %v1958_v29  ;;  %v1961_v28 = vmax.f32 %v3959_v34, 1e-30  ;;  %v3965_v35 = vmul.f32 %v2584_v11, %v1819_v62  ;;  %vm1945_vm14 = vcmp.gt.f32.partialorder %v3959_v34, 0.0 }
 0x434   : > { %v2588_v50 = vpop.eup %2587  ;;  %2607 = vrcp.f32 %v1959_v41  ;;  %v1962_v56 = vmax.f32 %v3962_v51, 1e-30  ;;  %v3968_v46 = vmul.f32 %v2586_v5, %v1820_v40  ;;  %vm1946_vm15 = vcmp.gt.f32.partialorder %v3962_v51, 0.0 }
 0x435   : > { %v2590_v44 = vpop.eup %2589  ;;  %2609 = vrcp.f32 %v1960_v27  ;;  %v1963_v36 = vmax.f32 %v3965_v35, 1e-30  ;;  %v3971_v54 = vmul.f32 %v2588_v50, %v1821_v13  ;;  %vm1947_vm0 = vcmp.gt.f32.partialorder %v3965_v35, 0.0 }
 0x436   : > { %v2592_v10 = vpop.eup %2591  ;;  %2611 = vrcp.f32 %v1961_v28  ;;  %v1964_v1 = vmax.f32 %v3968_v46, 1e-30  ;;  %v3975_v43 = vmul.f32 %v2590_v44, %v1822_v24  ;;  %vm1948_vm1 = vcmp.gt.f32.partialorder %v3968_v46, 0.0 }
 0x437   : > { %v2594_v16 = vpop.eup %2593  ;;  %2613 = vrcp.f32 %v1962_v56  ;;  %v1965_v25 = vmax.f32 %v3971_v54, 1e-30  ;;  %v3979_v55 = vmul.f32 %v2592_v10, %v1823_v0  ;;  %vm1949_vm2 = vcmp.gt.f32.partialorder %v3971_v54, 0.0 }
 0x438   : > { %v2596_v57 = vpop.eup %2595  ;;  %2615 = vrcp.f32 %v1963_v36  ;;  %v1966_v26 = vmax.f32 %v3975_v43, 1e-30  ;;  %v3983_v48 = vmul.f32 %v2594_v16, %v1824_v12  ;;  %vm1950_vm3 = vcmp.gt.f32.partialorder %v3975_v43, 0.0 }
 0x439   : > { %v2598_v22 = vpop.eup %2597  ;;  %v2001_v14 = vsel %vm1937_vm6, %v2596_v57, 0.0  ;;  %2617 = vrcp.f32 %v1964_v1  ;;  %v1967_v19 = vmax.f32 %v3979_v55, 1e-30  ;;  %vm1951_vm4 = vcmp.gt.f32.partialorder %v3979_v55, 0.0 }
 0x43a   : > { %v2600_v63 = vpop.eup %2599  ;;  %2017 = vst.msk [vmem:[%s2879_s17] sm:$0xff] %vm1740_vm5, %v2001_v14  ;;  %v2002_v38 = vsel %vm1938_vm7, %v2598_v22, 0.0  ;;  %2619 = vrcp.f32 %v1965_v25  ;;  %v1968_v2 = vmax.f32 %v3983_v48, 1e-30  ;;  %vm1952_vm6 = vcmp.gt.f32.partialorder %v3983_v48, 0.0 }
 0x43b   : > { %v2602_v3 = vpop.eup %2601  ;;  %2018 = vst.msk [vmem:[%s2879_s17 + $0x8] sm:$0xff] %vm1740_vm5, %v2002_v38  ;;  %v2003_v61 = vsel %vm1939_vm8, %v2600_v63, 0.0  ;;  %2621 = vrcp.f32 %v1966_v26 }
 0x43c   : > { %v2604_v23 = vpop.eup %2603  ;;  %2019 = vst.msk [vmem:[%s2879_s17 + $0x10] sm:$0xff] %vm1740_vm5, %v2003_v61  ;;  %v2004_v47 = vsel %vm1940_vm9, %v2602_v3, 0.0  ;;  %2623 = vrcp.f32 %v1967_v19 }
 0x43d   : > { %v2606_v32 = vpop.eup %2605  ;;  %2020 = vst.msk [vmem:[%s2879_s17 + $0x18] sm:$0xff] %vm1740_vm5, %v2004_v47  ;;  %v2005_v42 = vsel %vm1941_vm10, %v2604_v23, 0.0  ;;  %2625 = vrcp.f32 %v1968_v2 }
 0x43e   : > { %v2608_v17 = vpop.eup %2607  ;;  %2021 = vst.msk [vmem:[%s2879_s17 + $0x20] sm:$0xff] %vm1740_vm5, %v2005_v42  ;;  %v2006_v9 = vsel %vm1942_vm11, %v2606_v32, 0.0 }
 0x43f   : > { %v2610_v15 = vpop.eup %2609  ;;  %2022 = vst.msk [vmem:[%s2879_s17 + $0x28] sm:$0xff] %vm1740_vm5, %v2006_v9  ;;  %v2007_v37 = vsel %vm1943_vm12, %v2608_v17, 0.0 }
 0x440   : > { %v2612_v49 = vpop.eup %2611  ;;  %2023 = vst.msk [vmem:[%s2879_s17 + $0x30] sm:$0xff] %vm1740_vm5, %v2007_v37  ;;  %v2008_v45 = vsel %vm1944_vm13, %v2610_v15, 0.0 }
 0x441   : > { %v2614_v33 = vpop.eup %2613  ;;  %2024 = vst.msk [vmem:[%s2879_s17 + $0x38] sm:$0xff] %vm1740_vm5, %v2008_v45  ;;  %v2009_v7 = vsel %vm1945_vm14, %v2612_v49, 0.0 }
 0x442   : > { %v2616_v21 = vpop.eup %2615  ;;  %2025 = vst.msk [vmem:[%s2879_s17 + $0x40] sm:$0xff] %vm1740_vm5, %v2009_v7  ;;  %v2010_v53 = vsel %vm1946_vm15, %v2614_v33, 0.0 }
 0x443   : > { %v2618_v60 = vpop.eup %2617  ;;  %2026 = vst.msk [vmem:[%s2879_s17 + $0x48] sm:$0xff] %vm1740_vm5, %v2010_v53  ;;  %v2011_v39 = vsel %vm1947_vm0, %v2616_v21, 0.0 }
 0x444   : > { %v2620_v52 = vpop.eup %2619  ;;  %2027 = vst.msk [vmem:[%s2879_s17 + $0x50] sm:$0xff] %vm1740_vm5, %v2011_v39  ;;  %v2012_v18 = vsel %vm1948_vm1, %v2618_v60, 0.0 }
 0x445   : > { %v2622_v31 = vpop.eup %2621  ;;  %2028 = vst.msk [vmem:[%s2879_s17 + $0x58] sm:$0xff] %vm1740_vm5, %v2012_v18  ;;  %v2013_v8 = vsel %vm1949_vm2, %v2620_v52, 0.0 }
 0x446   : > { %v2624_v30 = vpop.eup %2623  ;;  %2029 = vst.msk [vmem:[%s2879_s17 + $0x60] sm:$0xff] %vm1740_vm5, %v2013_v8  ;;  %v2014_v4 = vsel %vm1950_vm3, %v2622_v31, 0.0 }
 0x447   : > { %v2626_v59 = vpop.eup %2625  ;;  %2030 = vst.msk [vmem:[%s2879_s17 + $0x68] sm:$0xff] %vm1740_vm5, %v2014_v4  ;;  %v2015_v58 = vsel %vm1951_vm4, %v2624_v30, 0.0 }
 0x448   : > { %2031 = vst.msk [vmem:[%s2879_s17 + $0x70] sm:$0xff] %vm1740_vm5, %v2015_v58  ;;  %v2016_v29 = vsel %vm1952_vm6, %v2626_v59, 0.0 }
 0x449   : > { %2032 = vst.msk [vmem:[%s2879_s17 + $0x78] sm:$0xff] %vm1740_vm5, %v2016_v29 }
 0x44a PF: > { %s18_s9 = sadd.s32 1, %s2697_s9   ;;  %s4293_s10 = sld [smem:[#allocation7_spill]] }
 0x44b   : > { %p15_p2 = scmp.ge.s32.totalorder %s18_s9, 6   ;;  %s4294_s12 = sld [smem:[#allocation8_spill]] }
 0x44c   : > { %s4295_s24 = smov %s2669_s25  ;;  %s4296_s25 = smov %s2820_s20 }
 0x44d   : > { %s4297_s26 = smov %s2677_s27  ;;  %s4298_s27 = smov %s2810_s15 }
 0x44e   : > { %s4299_s28 = smov %s2689_s30  ;;  %s4300_s29 = smov %s2693_s8 }
 0x44f   :  { %17 = sbr.rel (!%p15_p2) target bundleno = 8 (0x8), region = 197 }
 0x450   : > { %s4301_s30 = smov %s4293_s10 }
 0x451   : > { %s4302_s8 = smov %s4294_s12 }

</bundles_post_ra>
